<compile_context>
chip_gen: v7x
topology: tpu7x:2x2x1
jax: 0.10.0
libtpu: 0.0.40
codegen_flags: <defaults>
</compile_context>

<pallas_src>
import functools

import jax
import jax.numpy as jnp
from jax.experimental import pallas as pl
from jax.experimental.pallas import tpu as pltpu


# ----------------------------------------------------------------------------
# Fused single-K-tile matmul + bias + activation Pallas kernel
# ----------------------------------------------------------------------------
def _mm_bias_act_kernel(x_ref, w_ref, b_ref, o_ref, *, act):
    """o = act(x @ w + b); bf16 operands, f32 accumulation / bias / activation."""
    y = jnp.dot(x_ref[...], w_ref[...], preferred_element_type=jnp.float32)
    y = y + b_ref[...]                       # (1, tn) f32 broadcast over rows
    if act == "leaky_relu":
        y = jnp.where(y > 0, y, 0.2 * y)
    elif act == "sigmoid":
        y = 1.0 / (1.0 + jnp.exp(-y))
    o_ref[...] = y.astype(o_ref.dtype)


def _pick_tiles(M, N):
    """Legal, MXU-friendly tiles; prefer >=2 grid steps so v7x's 2nd TC works."""
    tn = 128 if N % 128 == 0 else N
    if M % 8 == 0:
        tm = min(256, M)
        while M % tm:
            tm -= 8
        if (M // tm) * (N // tn) < 2 and M % 16 == 0 and M // 2 >= 8:
            tm = M // 2
    else:
        tm = M          # full-dim block (e.g. the B=2 FC rows)
    return tm, tn


def fused_matmul(x_bf16, w_bf16, b_f32, act="none", out_dtype=jnp.float32):
    """act((M,K)bf16 @ (K,N)bf16 + (1,N)f32) -> (M,N) out_dtype. Single K tile."""
    M, K = x_bf16.shape
    K2, N = w_bf16.shape
    assert K == K2 and b_f32.shape == (1, N)
    tm, tn = _pick_tiles(M, N)
    grid = (M // tm, N // tn)

    return pl.pallas_call(
        functools.partial(_mm_bias_act_kernel, act=act),
        out_shape=jax.ShapeDtypeStruct((M, N), out_dtype),
        grid_spec=pltpu.PrefetchScalarGridSpec(
            num_scalar_prefetch=0,
            grid=grid,
            in_specs=[
                pl.BlockSpec((tm, K), lambda i, j: (i, 0)),
                pl.BlockSpec((K, tn), lambda i, j: (0, j)),
                pl.BlockSpec((1, tn), lambda i, j: (0, j)),
            ],
            out_specs=pl.BlockSpec((tm, tn), lambda i, j: (i, j)),
        ),
        compiler_params=pltpu.CompilerParams(
            dimension_semantics=("parallel", "parallel"),
            vmem_limit_bytes=32 * 1024 * 1024,        # v7x-safe scoped budget
        ),
    )(x_bf16, w_bf16, b_f32)


# ----------------------------------------------------------------------------
# Conv layer = static-strided-slice patch extraction + fused matmul kernel
# ----------------------------------------------------------------------------
def _extract_patches(x, kh, kw, stride, pad):
    """NHWC x -> (B*oh*ow, kh*kw*C) patch matrix via 16 static strided slices.

    Column order is (kh, kw, C) with C fastest (weights are laid out to match).
    No gather HLO: pad + strided basic slices + concat + contiguous reshape.
    """
    B, H, W, C = x.shape
    xp = jnp.pad(x, ((0, 0), (pad, pad), (pad, pad), (0, 0)))
    oh = (H + 2 * pad - kh) // stride + 1
    ow = (W + 2 * pad - kw) // stride + 1
    taps = []
    for ih in range(kh):
        for iw in range(kw):
            taps.append(xp[:, ih:ih + (oh - 1) * stride + 1:stride,
                           iw:iw + (ow - 1) * stride + 1:stride, :])
    patches = jnp.concatenate(taps, axis=-1)          # (B, oh, ow, kh*kw*C)
    return patches.reshape(B * oh * ow, kh * kw * C), oh, ow


def conv_layer(x, w2, b2, act, out_dtype):
    """x: NHWC bf16; w2: matmul-ready (K, N) bf16; b2: (1, N) f32."""
    B = x.shape[0]
    cols, oh, ow = _extract_patches(x, 4, 4, 2, 1)
    y = fused_matmul(cols, w2, b2, act=act, out_dtype=out_dtype)
    return y.reshape(B, oh, ow, -1)


# ----------------------------------------------------------------------------
# Parameters: raw PyTorch-layout init + one-time fold/pad/cast prep
# ----------------------------------------------------------------------------
def init_params(key, input_channels, img_size):
    s = img_size // 8
    keys = jax.random.split(key, 16)

    def nrm(k, shape, scale=0.05):
        return scale * jax.random.normal(k, shape, jnp.float32)

    return {
        # conv weights: PyTorch layout (out_c, in_c, kh, kw)
        "conv1_w": nrm(keys[0], (64, input_channels, 4, 4)),
        "conv1_b": nrm(keys[1], (64,), 0.01),
        "conv2_w": nrm(keys[2], (128, 64, 4, 4)),
        "conv2_b": nrm(keys[3], (128,), 0.01),
        "bn2_gamma": 1.0 + nrm(keys[4], (128,), 0.1),
        "bn2_beta": nrm(keys[5], (128,), 0.05),
        "bn2_mean": nrm(keys[6], (128,), 0.05),
        "bn2_var": 0.8 + 0.4 * jax.random.uniform(keys[7], (128,), jnp.float32),
        "conv3_w": nrm(keys[8], (256, 128, 4, 4)),
        "conv3_b": nrm(keys[9], (256,), 0.01),
        "bn3_gamma": 1.0 + nrm(keys[10], (256,), 0.1),
        "bn3_beta": nrm(keys[11], (256,), 0.05),
        "bn3_mean": nrm(keys[12], (256,), 0.05),
        "bn3_var": 0.8 + 0.4 * jax.random.uniform(keys[13], (256,), jnp.float32),
        # linear: PyTorch layout (out_features, in_features), flatten order (C,H,W)
        "fc_w": nrm(keys[14], (1, 256 * s * s)),
        "fc_b": nrm(keys[15], (1,), 0.01),
    }


def prepare_params(p):
    """Fold BN (eval mode), bake layout permutations, pad output channels to
    lane-dense multiples of 128 and cast to bf16 ONCE."""
    eps = 1e-5

    def conv_w_to_mat(w, in_pad=None):
        # (out_c, in_c, kh, kw) -> (kh*kw*in_c, out_c); matches patch columns.
        out_c, in_c, kh, kw = w.shape
        if in_pad is not None and in_pad > in_c:
            w = jnp.concatenate(
                [w, jnp.zeros((out_c, in_pad - in_c, kh, kw), w.dtype)], axis=1)
        return jnp.transpose(w, (2, 3, 1, 0)).reshape(kh * kw * w.shape[1], out_c)

    def pad_mat(w2, b, n_pad):
        K, N = w2.shape
        wp = jnp.zeros((K, n_pad), jnp.float32).at[:, :N].set(w2)
        bp = jnp.zeros((1, n_pad), jnp.float32).at[0, :N].set(b)
        return wp.astype(jnp.bfloat16), bp

    def fold_bn(w, b, gamma, beta, mean, var):
        scale = gamma / jnp.sqrt(var + eps)              # per out-channel
        return w * scale[:, None, None, None], (b - mean) * scale + beta

    out = {}
    # conv1: out 64 -> padded to 128 lanes (padded channels produce exact zeros).
    w1 = conv_w_to_mat(p["conv1_w"])
    out["w1"], out["b1"] = pad_mat(w1, p["conv1_b"], 128)

    # conv2 (+BN2): consumes the 128-channel-padded conv1 output.
    w2f, b2f = fold_bn(p["conv2_w"], p["conv2_b"], p["bn2_gamma"],
                       p["bn2_beta"], p["bn2_mean"], p["bn2_var"])
    w2 = conv_w_to_mat(w2f, in_pad=128)
    out["w2"], out["b2"] = pad_mat(w2, b2f, 128)

    # conv3 (+BN3)
    w3f, b3f = fold_bn(p["conv3_w"], p["conv3_b"], p["bn3_gamma"],
                       p["bn3_beta"], p["bn3_mean"], p["bn3_var"])
    w3 = conv_w_to_mat(w3f)
    out["w3"], out["b3"] = pad_mat(w3, b3f, 256)

    # fc: PyTorch Flatten order is (C,H,W); activations are NHWC, so permute
    # the weight rows once here instead of transposing activations at runtime.
    s2 = p["fc_w"].shape[1] // 256
    s = int(round(s2 ** 0.5))
    wf = p["fc_w"].reshape(1, 256, s, s)
    wf = jnp.transpose(wf, (0, 2, 3, 1)).reshape(1, s * s * 256).T      # (K, 1)
    out["wf"], out["bf"] = pad_mat(wf, p["fc_b"], 128)
    return out


# ----------------------------------------------------------------------------
# Forward (Pallas path) and pure-JAX f32 reference
# ----------------------------------------------------------------------------
def discriminator_forward(params, x_nchw):
    B = x_nchw.shape[0]
    # NCHW -> NHWC and cast to bf16 BEFORE any patch extraction.
    x = jnp.transpose(x_nchw, (0, 2, 3, 1)).astype(jnp.bfloat16)

    h = conv_layer(x, params["w1"], params["b1"], "leaky_relu", jnp.bfloat16)
    h = conv_layer(h, params["w2"], params["b2"], "leaky_relu", jnp.bfloat16)
    h = conv_layer(h, params["w3"], params["b3"], "leaky_relu", jnp.bfloat16)

    # Flatten in NHWC order (fc weight rows were permuted to match at prep).
    flat = h.reshape(B, -1)                                  # (B, 1024) bf16
    probs = fused_matmul(flat, params["wf"], params["bf"],
                         act="sigmoid", out_dtype=jnp.float32)
    return probs[:, :1]                                      # (B, 1)


def reference_forward(p, x_nchw):
    """Pure-JAX f32 eval-mode reference matching the PyTorch module."""
    eps = 1e-5

    def conv(h, w, b):
        y = jax.lax.conv_general_dilated(
            h, w, window_strides=(2, 2), padding=((1, 1), (1, 1)),
            dimension_numbers=("NCHW", "OIHW", "NCHW"))
        return y + b[None, :, None, None]

    def bn(h, g, bt, m, v):
        return ((h - m[None, :, None, None])
                / jnp.sqrt(v[None, :, None, None] + eps)
                * g[None, :, None, None] + bt[None, :, None, None])

    def lrelu(h):
        return jnp.where(h > 0, h, 0.2 * h)

    h = lrelu(conv(x_nchw, p["conv1_w"], p["conv1_b"]))
    h = lrelu(bn(conv(h, p["conv2_w"], p["conv2_b"]),
                 p["bn2_gamma"], p["bn2_beta"], p["bn2_mean"], p["bn2_var"]))
    h = lrelu(bn(conv(h, p["conv3_w"], p["conv3_b"]),
                 p["bn3_gamma"], p["bn3_beta"], p["bn3_mean"], p["bn3_var"]))
    flat = h.reshape(h.shape[0], -1)                         # (C,H,W) flatten
    logits = flat @ p["fc_w"].T + p["fc_b"]
    return jax.nn.sigmoid(logits)


# ----------------------------------------------------------------------------
if __name__ == "__main__":
    batch, input_channels, img_size = 2, 4, 16

    key = jax.random.PRNGKey(0)
    k_params, k_x = jax.random.split(key)
    raw_params = init_params(k_params, input_channels, img_size)
    params = prepare_params(raw_params)          # one-time fold/pad/cast
    x = jax.random.normal(k_x, (batch, input_channels, img_size, img_size),
                          jnp.float32)

    fwd = jax.jit(discriminator_forward)
    out = fwd(params, x)
    jax.block_until_ready(out)

    ref = reference_forward(raw_params, x)

    assert out.shape == (batch, 1)
    assert bool(jnp.all((out >= 0.0) & (out <= 1.0)))          # sigmoid range
    max_err = float(jnp.max(jnp.abs(out - ref)))
    assert max_err < 0.03, f"max abs diff vs f32 reference: {max_err}"
    print("KERNEL_OK")
</pallas_src>

<mosaic_0001>
module attributes {stable_mosaic.version = 11 : i64} {
  func.func @_mm_bias_act_kernel(%arg0: i32, %arg1: i32, %arg2: memref<64x64xbf16, #tpu.memory_space<vmem>>, %arg3: memref<64x128xbf16, #tpu.memory_space<vmem>>, %arg4: memref<1x128xf32, #tpu.memory_space<vmem>>, %arg5: memref<64x128xbf16, #tpu.memory_space<vmem>>) attributes {dimension_semantics = [#tpu.dimension_semantics<parallel>, #tpu.dimension_semantics<parallel>], iteration_bounds = array<i64: 2, 1>, scalar_prefetch = 0 : i64, scratch_operands = 0 : i64, tpu.core_type = #tpu.core_type<tc>, window_params = [{transform_indices = @transform_0, window_bounds = array<i64: 64, 64>}, {transform_indices = @transform_1, window_bounds = array<i64: 64, 128>}, {transform_indices = @transform_2, window_bounds = array<i64: 1, 128>}, {transform_indices = @transform_3, window_bounds = array<i64: 64, 128>}]} {
    %c0 = arith.constant 0 : index
    %c0_0 = arith.constant 0 : index
    %0 = vector.load %arg2[%c0, %c0_0] : memref<64x64xbf16, #tpu.memory_space<vmem>>, vector<64x64xbf16>
    %c0_1 = arith.constant 0 : index
    %c0_2 = arith.constant 0 : index
    %1 = vector.load %arg3[%c0_1, %c0_2] : memref<64x128xbf16, #tpu.memory_space<vmem>>, vector<64x128xbf16>
    %cst = arith.constant dense<0.000000e+00> : vector<64x128xf32>
    %2 = tpu.matmul %0, %1, %cst {dimension_numbers = #tpu.dot_dimension_numbers<[1], [0], [0], [1], [0, 0, 1, 1], [], []>} : vector<64x64xbf16>, vector<64x128xbf16>, vector<64x128xf32> -> vector<64x128xf32>
    %c0_3 = arith.constant 0 : index
    %c0_4 = arith.constant 0 : index
    %3 = vector.load %arg4[%c0_3, %c0_4] : memref<1x128xf32, #tpu.memory_space<vmem>>, vector<1x128xf32>
    %4 = vector.broadcast %3 : vector<1x128xf32> to vector<64x128xf32>
    %5 = arith.addf %2, %4 : vector<64x128xf32>
    %cst_5 = arith.constant 0.000000e+00 : f32
    %6 = vector.broadcast %cst_5 : f32 to vector<64x128xf32>
    %7 = arith.cmpf ogt, %5, %6 : vector<64x128xf32>
    %cst_6 = arith.constant 2.000000e-01 : f32
    %8 = vector.broadcast %cst_6 : f32 to vector<64x128xf32>
    %9 = arith.mulf %8, %5 : vector<64x128xf32>
    %10 = arith.select %7, %5, %9 : vector<64x128xi1>, vector<64x128xf32>
    %11 = arith.truncf %10 : vector<64x128xf32> to vector<64x128xbf16>
    %c0_7 = arith.constant 0 : index
    %c0_8 = arith.constant 0 : index
    %12 = vector.load %arg5[%c0_7, %c0_8] : memref<64x128xbf16, #tpu.memory_space<vmem>>, vector<64x128xbf16>
    tpu.vector_store %arg5[%c0_7, %c0_8], %11 {strides = array<i32>} : memref<64x128xbf16, #tpu.memory_space<vmem>>, vector<64x128xbf16>,
    return
  }
  func.func @transform_0(%arg0: i32, %arg1: i32) -> (i32, i32) {
    %c0_i32 = arith.constant 0 : i32
    %c0_i32_0 = arith.constant 0 : i32
    return %arg0, %c0_i32 : i32, i32
  }
  func.func @transform_1(%arg0: i32, %arg1: i32) -> (i32, i32) {
    %c0_i32 = arith.constant 0 : i32
    %c0_i32_0 = arith.constant 0 : i32
    return %c0_i32, %arg1 : i32, i32
  }
  func.func @transform_2(%arg0: i32, %arg1: i32) -> (i32, i32) {
    %c0_i32 = arith.constant 0 : i32
    %c0_i32_0 = arith.constant 0 : i32
    return %c0_i32, %arg1 : i32, i32
  }
  func.func @transform_3(%arg0: i32, %arg1: i32) -> (i32, i32) {
    %c0_i32 = arith.constant 0 : i32
    return %arg0, %arg1 : i32, i32
  }
}

module attributes {stable_mosaic.version = 11 : i64} {
  func.func @_mm_bias_act_kernel(%arg0: i32, %arg1: i32, %arg2: memref<16x2048xbf16, #tpu.memory_space<vmem>>, %arg3: memref<2048x128xbf16, #tpu.memory_space<vmem>>, %arg4: memref<1x128xf32, #tpu.memory_space<vmem>>, %arg5: memref<16x128xbf16, #tpu.memory_space<vmem>>) attributes {dimension_semantics = [#tpu.dimension_semantics<parallel>, #tpu.dimension_semantics<parallel>], iteration_bounds = array<i64: 2, 1>, scalar_prefetch = 0 : i64, scratch_operands = 0 : i64, tpu.core_type = #tpu.core_type<tc>, window_params = [{transform_indices = @transform_0, window_bounds = array<i64: 16, 2048>}, {transform_indices = @transform_1, window_bounds = array<i64: 2048, 128>}, {transform_indices = @transform_2, window_bounds = array<i64: 1, 128>}, {transform_indices = @transform_3, window_bounds = array<i64: 16, 128>}]} {
    %c0 = arith.constant 0 : index
    %c0_0 = arith.constant 0 : index
    %0 = vector.load %arg2[%c0, %c0_0] : memref<16x2048xbf16, #tpu.memory_space<vmem>>, vector<16x2048xbf16>
    %c0_1 = arith.constant 0 : index
    %c0_2 = arith.constant 0 : index
    %1 = vector.load %arg3[%c0_1, %c0_2] : memref<2048x128xbf16, #tpu.memory_space<vmem>>, vector<2048x128xbf16>
    %cst = arith.constant dense<0.000000e+00> : vector<16x128xf32>
    %2 = tpu.matmul %0, %1, %cst {dimension_numbers = #tpu.dot_dimension_numbers<[1], [0], [0], [1], [0, 0, 1, 1], [], []>} : vector<16x2048xbf16>, vector<2048x128xbf16>, vector<16x128xf32> -> vector<16x128xf32>
    %c0_3 = arith.constant 0 : index
    %c0_4 = arith.constant 0 : index
    %3 = vector.load %arg4[%c0_3, %c0_4] : memref<1x128xf32, #tpu.memory_space<vmem>>, vector<1x128xf32>
    %4 = vector.broadcast %3 : vector<1x128xf32> to vector<16x128xf32>
    %5 = arith.addf %2, %4 : vector<16x128xf32>
    %cst_5 = arith.constant 0.000000e+00 : f32
    %6 = vector.broadcast %cst_5 : f32 to vector<16x128xf32>
    %7 = arith.cmpf ogt, %5, %6 : vector<16x128xf32>
    %cst_6 = arith.constant 2.000000e-01 : f32
    %8 = vector.broadcast %cst_6 : f32 to vector<16x128xf32>
    %9 = arith.mulf %8, %5 : vector<16x128xf32>
    %10 = arith.select %7, %5, %9 : vector<16x128xi1>, vector<16x128xf32>
    %11 = arith.truncf %10 : vector<16x128xf32> to vector<16x128xbf16>
    %c0_7 = arith.constant 0 : index
    %c0_8 = arith.constant 0 : index
    %12 = vector.load %arg5[%c0_7, %c0_8] : memref<16x128xbf16, #tpu.memory_space<vmem>>, vector<16x128xbf16>
    tpu.vector_store %arg5[%c0_7, %c0_8], %11 {strides = array<i32>} : memref<16x128xbf16, #tpu.memory_space<vmem>>, vector<16x128xbf16>,
    return
  }
  func.func @transform_0(%arg0: i32, %arg1: i32) -> (i32, i32) {
    %c0_i32 = arith.constant 0 : i32
    %c0_i32_0 = arith.constant 0 : i32
    return %arg0, %c0_i32 : i32, i32
  }
  func.func @transform_1(%arg0: i32, %arg1: i32) -> (i32, i32) {
    %c0_i32 = arith.constant 0 : i32
    %c0_i32_0 = arith.constant 0 : i32
    return %c0_i32, %arg1 : i32, i32
  }
  func.func @transform_2(%arg0: i32, %arg1: i32) -> (i32, i32) {
    %c0_i32 = arith.constant 0 : i32
    %c0_i32_0 = arith.constant 0 : i32
    return %c0_i32, %arg1 : i32, i32
  }
  func.func @transform_3(%arg0: i32, %arg1: i32) -> (i32, i32) {
    %c0_i32 = arith.constant 0 : i32
    return %arg0, %arg1 : i32, i32
  }
}

module attributes {stable_mosaic.version = 11 : i64} {
  func.func @_mm_bias_act_kernel(%arg0: i32, %arg1: i32, %arg2: memref<8x2048xbf16, #tpu.memory_space<vmem>>, %arg3: memref<2048x128xbf16, #tpu.memory_space<vmem>>, %arg4: memref<1x128xf32, #tpu.memory_space<vmem>>, %arg5: memref<8x128xbf16, #tpu.memory_space<vmem>>) attributes {dimension_semantics = [#tpu.dimension_semantics<parallel>, #tpu.dimension_semantics<parallel>], iteration_bounds = array<i64: 1, 2>, scalar_prefetch = 0 : i64, scratch_operands = 0 : i64, tpu.core_type = #tpu.core_type<tc>, window_params = [{transform_indices = @transform_0, window_bounds = array<i64: 8, 2048>}, {transform_indices = @transform_1, window_bounds = array<i64: 2048, 128>}, {transform_indices = @transform_2, window_bounds = array<i64: 1, 128>}, {transform_indices = @transform_3, window_bounds = array<i64: 8, 128>}]} {
    %c0 = arith.constant 0 : index
    %c0_0 = arith.constant 0 : index
    %0 = vector.load %arg2[%c0, %c0_0] : memref<8x2048xbf16, #tpu.memory_space<vmem>>, vector<8x2048xbf16>
    %c0_1 = arith.constant 0 : index
    %c0_2 = arith.constant 0 : index
    %1 = vector.load %arg3[%c0_1, %c0_2] : memref<2048x128xbf16, #tpu.memory_space<vmem>>, vector<2048x128xbf16>
    %cst = arith.constant dense<0.000000e+00> : vector<8x128xf32>
    %2 = tpu.matmul %0, %1, %cst {dimension_numbers = #tpu.dot_dimension_numbers<[1], [0], [0], [1], [0, 0, 1, 1], [], []>} : vector<8x2048xbf16>, vector<2048x128xbf16>, vector<8x128xf32> -> vector<8x128xf32>
    %c0_3 = arith.constant 0 : index
    %c0_4 = arith.constant 0 : index
    %3 = vector.load %arg4[%c0_3, %c0_4] : memref<1x128xf32, #tpu.memory_space<vmem>>, vector<1x128xf32>
    %4 = vector.broadcast %3 : vector<1x128xf32> to vector<8x128xf32>
    %5 = arith.addf %2, %4 : vector<8x128xf32>
    %cst_5 = arith.constant 0.000000e+00 : f32
    %6 = vector.broadcast %cst_5 : f32 to vector<8x128xf32>
    %7 = arith.cmpf ogt, %5, %6 : vector<8x128xf32>
    %cst_6 = arith.constant 2.000000e-01 : f32
    %8 = vector.broadcast %cst_6 : f32 to vector<8x128xf32>
    %9 = arith.mulf %8, %5 : vector<8x128xf32>
    %10 = arith.select %7, %5, %9 : vector<8x128xi1>, vector<8x128xf32>
    %11 = arith.truncf %10 : vector<8x128xf32> to vector<8x128xbf16>
    %c0_7 = arith.constant 0 : index
    %c0_8 = arith.constant 0 : index
    %12 = vector.load %arg5[%c0_7, %c0_8] : memref<8x128xbf16, #tpu.memory_space<vmem>>, vector<8x128xbf16>
    tpu.vector_store %arg5[%c0_7, %c0_8], %11 {strides = array<i32>} : memref<8x128xbf16, #tpu.memory_space<vmem>>, vector<8x128xbf16>,
    return
  }
  func.func @transform_0(%arg0: i32, %arg1: i32) -> (i32, i32) {
    %c0_i32 = arith.constant 0 : i32
    %c0_i32_0 = arith.constant 0 : i32
    return %arg0, %c0_i32 : i32, i32
  }
  func.func @transform_1(%arg0: i32, %arg1: i32) -> (i32, i32) {
    %c0_i32 = arith.constant 0 : i32
    %c0_i32_0 = arith.constant 0 : i32
    return %c0_i32, %arg1 : i32, i32
  }
  func.func @transform_2(%arg0: i32, %arg1: i32) -> (i32, i32) {
    %c0_i32 = arith.constant 0 : i32
    %c0_i32_0 = arith.constant 0 : i32
    return %c0_i32, %arg1 : i32, i32
  }
  func.func @transform_3(%arg0: i32, %arg1: i32) -> (i32, i32) {
    %c0_i32 = arith.constant 0 : i32
    return %arg0, %arg1 : i32, i32
  }
}

module attributes {stable_mosaic.version = 11 : i64} {
  func.func @_mm_bias_act_kernel(%arg0: i32, %arg1: i32, %arg2: memref<2x1024xbf16, #tpu.memory_space<vmem>>, %arg3: memref<1024x128xbf16, #tpu.memory_space<vmem>>, %arg4: memref<1x128xf32, #tpu.memory_space<vmem>>, %arg5: memref<2x128xf32, #tpu.memory_space<vmem>>) attributes {dimension_semantics = [#tpu.dimension_semantics<parallel>, #tpu.dimension_semantics<parallel>], iteration_bounds = array<i64: 1, 1>, scalar_prefetch = 0 : i64, scratch_operands = 0 : i64, tpu.core_type = #tpu.core_type<tc>, window_params = [{transform_indices = @transform_0, window_bounds = array<i64: 2, 1024>}, {transform_indices = @transform_1, window_bounds = array<i64: 1024, 128>}, {transform_indices = @transform_2, window_bounds = array<i64: 1, 128>}, {transform_indices = @transform_3, window_bounds = array<i64: 2, 128>}]} {
    %c0 = arith.constant 0 : index
    %c0_0 = arith.constant 0 : index
    %0 = vector.load %arg2[%c0, %c0_0] : memref<2x1024xbf16, #tpu.memory_space<vmem>>, vector<2x1024xbf16>
    %c0_1 = arith.constant 0 : index
    %c0_2 = arith.constant 0 : index
    %1 = vector.load %arg3[%c0_1, %c0_2] : memref<1024x128xbf16, #tpu.memory_space<vmem>>, vector<1024x128xbf16>
    %cst = arith.constant dense<0.000000e+00> : vector<2x128xf32>
    %2 = tpu.matmul %0, %1, %cst {dimension_numbers = #tpu.dot_dimension_numbers<[1], [0], [0], [1], [0, 0, 1, 1], [], []>} : vector<2x1024xbf16>, vector<1024x128xbf16>, vector<2x128xf32> -> vector<2x128xf32>
    %c0_3 = arith.constant 0 : index
    %c0_4 = arith.constant 0 : index
    %3 = vector.load %arg4[%c0_3, %c0_4] : memref<1x128xf32, #tpu.memory_space<vmem>>, vector<1x128xf32>
    %4 = vector.broadcast %3 : vector<1x128xf32> to vector<2x128xf32>
    %5 = arith.addf %2, %4 : vector<2x128xf32>
    %cst_5 = arith.constant 0.000000e+00 : f32
    %6 = vector.broadcast %cst_5 : f32 to vector<2x128xf32>
    %7 = arith.subf %6, %5 : vector<2x128xf32>
    %8 = math.exp %7 : vector<2x128xf32>
    %cst_6 = arith.constant 1.000000e+00 : f32
    %9 = vector.broadcast %cst_6 : f32 to vector<2x128xf32>
    %10 = arith.addf %9, %8 : vector<2x128xf32>
    %cst_7 = arith.constant 1.000000e+00 : f32
    %11 = vector.broadcast %cst_7 : f32 to vector<2x128xf32>
    %12 = arith.divf %11, %10 : vector<2x128xf32>
    %c0_8 = arith.constant 0 : index
    %c0_9 = arith.constant 0 : index
    %13 = vector.load %arg5[%c0_8, %c0_9] : memref<2x128xf32, #tpu.memory_space<vmem>>, vector<2x128xf32>
    tpu.vector_store %arg5[%c0_8, %c0_9], %12 {strides = array<i32>} : memref<2x128xf32, #tpu.memory_space<vmem>>, vector<2x128xf32>,
    return
  }
  func.func @transform_0(%arg0: i32, %arg1: i32) -> (i32, i32) {
    %c0_i32 = arith.constant 0 : i32
    %c0_i32_0 = arith.constant 0 : i32
    return %arg0, %c0_i32 : i32, i32
  }
  func.func @transform_1(%arg0: i32, %arg1: i32) -> (i32, i32) {
    %c0_i32 = arith.constant 0 : i32
    %c0_i32_0 = arith.constant 0 : i32
    return %c0_i32, %arg1 : i32, i32
  }
  func.func @transform_2(%arg0: i32, %arg1: i32) -> (i32, i32) {
    %c0_i32 = arith.constant 0 : i32
    %c0_i32_0 = arith.constant 0 : i32
    return %c0_i32, %arg1 : i32, i32
  }
  func.func @transform_3(%arg0: i32, %arg1: i32) -> (i32, i32) {
    %c0_i32 = arith.constant 0 : i32
    return %arg0, %arg1 : i32, i32
  }
}

</mosaic_0001>

<bundles_post_ra>
// kernel: discriminator_forward.4
= control target key start
LH: loop header
LB: loop body
LE: loop exit
PB: predicated region body
PF: predicated region fallthrough
CT: control target
= control target key end

     0   :  { %s710_s12 = smov 0   ;;  %s712_s13 = smov 0   ;;  %s771_s0 = inlined_call_operand.vmem [shape: bf16[128,64], index: 0, kind: input, shape index: {}]   ;;  %s772_s1 = inlined_call_operand.vmem [shape: bf16[64,128], index: 1, kind: input, shape index: {}]   ;;  %s773_s2 = inlined_call_operand.vmem [shape: f32[1,128], index: 2, kind: input, shape index: {}]   ;;  %s774_s3 = inlined_call_operand.vmem [shape: bf16[128,128], index: 3, kind: output, shape index: {}]  }
   0x1   :  { %s714_s14 = smov 0  }
   0x2 LB: > { %s25_s15 = sadd.s32 1, %s684_s13  ;;  %p543_p0 = scmp.ge.s32.totalorder %s688_s14, 1  ;;  %s688_s14 = sphi %s714_s14, %s13_s14   ;;  %s684_s13 = sphi %s712_s13, %s776_s13   ;;  %s680_s12 = sphi %s710_s12, %s775_s12  }
   0x3   : > { %p27_p1 = scmp.ge.s32.totalorder %s25_s15, 2  ;;  %p169_p2 = scmp.lt.s32.totalorder %s688_s14, 3 }
   0x5   : > { %s778_s15 = smov (%p27_p1, %s25_s15), 0  ;;  %p170_p3 = pnand %p543_p0, %p169_p2 }
   0x6   : > { %v658_v0 = vld [vmem:[%s772_s1] sm:$0xff] (!%p170_p3)   ;;  %s544_s18 = sshll.u32 (!%p170_p3), %s680_s12, 3  ;;  %v659_v1 = vld [vmem:[%s772_s1 + $0x8] sm:$0xff] (!%p170_p3)   ;;  %v660_v2 = vld [vmem:[%s772_s1 + $0x10] sm:$0xff] (!%p170_p3)   ;;  %vm293_vm0 = vcmask (!%p170_p3), 523264  }
   0x7   : > { %173 = sbr.rel (%p170_p3) target bundleno = 248 (0xf8), region = 32  ;;  %p204_p4 = scmp.lt.s32.totalorder (!%p170_p3), %s544_s18, 15  ;;  %610 = vmatprep.subr.bf16.mxu0 (!%p170_p3), %v658_v0  ;;  %626 = vmatprep.subr.bf16.mxu1 (!%p170_p3), %v658_v0  ;;  %v661_v3 = vld [vmem:[%s772_s1 + $0x18] sm:$0xff] (!%p170_p3)   ;;  %v548_v8 = vld [vmem:[%s773_s2] ss:$0 sm:$0xff] (!%p170_p3) }
   0x8   : > { %611 = vmatpush3.bf16.msra.mxu0 (!%p170_p3), %v658_v0  ;;  %630 = vmatpush3.bf16.msra.mxu1 (!%p170_p3), %v658_v0 }
   0x9   : > { %612 = vmatprep.subr.bf16.mxu0 (!%p170_p3), %v659_v1  ;;  %627 = vmatprep.subr.bf16.mxu1 (!%p170_p3), %v659_v1 }
   0xc   : > { %613 = vmatpush3.bf16.msra.mxu0 (!%p170_p3), %v659_v1  ;;  %631 = vmatpush3.bf16.msra.mxu1 (!%p170_p3), %v659_v1 }
   0xd   : > { %614 = vmatprep.subr.bf16.mxu0 (!%p170_p3), %v660_v2  ;;  %628 = vmatprep.subr.bf16.mxu1 (!%p170_p3), %v660_v2 }
   0xe   : > { %s780_s18 = smov (!%p204_p4, %s544_s18), 15 }
   0xf   : > { %s545_s23 = sshll.u32 %s780_s18, 2 }
  0x10   : > { %s207_s28 = scalar_lea.vmem %s771_s0, %s545_s23  ;;  %615 = vmatpush3.bf16.msra.mxu0 %v660_v2  ;;  %632 = vmatpush3.bf16.msra.mxu1 %v660_v2  ;;  %s223_s6 = scalar_lea.vmem %s774_s3, %s545_s23 }
  0x11   : > { %v662_v4 = vld [vmem:[%s207_s28] sm:$0xff]   ;;  %v663_v5 = vld [vmem:[%s207_s28 + $0x10] sm:$0xff]   ;;  %616 = vmatprep.subr.bf16.mxu0 %v661_v3  ;;  %629 = vmatprep.subr.bf16.mxu1 %v661_v3  ;;  %v664_v6 = vld [vmem:[%s207_s28 + $0x8] sm:$0xff]  }
  0x12   : > { %618 = vmatprep.mubr.msk.bf16.mxu0 %vm293_vm0, %v662_v4  ;;  %622 = vmatprep.mubr.msk.bf16.mxu1 %vm293_vm0, %v663_v5  ;;  %v665_v7 = vld [vmem:[%s207_s28 + $0x18] sm:$0xff]  }
  0x14   : > { %617 = vmatpush3.bf16.msra.mxu0 %v661_v3  ;;  %633 = vmatpush3.bf16.msra.mxu1 %v661_v3 }
  0x17   : > { %619 = vmatmul.mubr.msk.bf16.vlgmr.msra.gmra.mrb[0].mxu0 %vm293_vm0, %v664_v6  ;;  %623 = vmatmul.mubr.msk.bf16.vlgmr.msra.gmra.mrb[0].mxu1 %vm293_vm0, %v665_v7 }
  0xea   : > { %v620_v9 = vpop.f32.mrb[0].mxu0  ;;  %v624_v10 = vpop.f32.mrb[0].mxu1 }
  0xeb   : > { %v349_v11 = vadd.f32 %v620_v9, %v548_v8  ;;  %v365_v12 = vadd.f32 %v624_v10, %v548_v8  ;;  %v340_v13 = vpop.f32.mrb[1].mxu0  ;;  %v356_v14 = vpop.f32.mrb[1].mxu1 }
  0xec   : > { %v341_v15 = vadd.f32 %v548_v8, %v340_v13  ;;  %v357_v16 = vadd.f32 %v548_v8, %v356_v14  ;;  %v621_v17 = vpop.f32.mrb[2].mxu0  ;;  %v625_v18 = vpop.f32.mrb[2].mxu1 }
  0xed   : > { %vm373_vm1 = vcmp.gt.f32.partialorder %v349_v11, 0.0  ;;  %v381_v19 = vmul.f32 0.2, %v349_v11  ;;  %vm377_vm2 = vcmp.gt.f32.partialorder %v365_v12, 0.0  ;;  %v385_v20 = vmul.f32 0.2, %v365_v12 }
  0xee   : > { %vm371_vm3 = vcmp.gt.f32.partialorder %v341_v15, 0.0  ;;  %v379_v21 = vmul.f32 0.2, %v341_v15  ;;  %vm375_vm4 = vcmp.gt.f32.partialorder %v357_v16, 0.0  ;;  %v383_v22 = vmul.f32 0.2, %v357_v16 }
  0xef   : > { %v352_v23 = vadd.f32 %v621_v17, %v548_v8  ;;  %v368_v24 = vadd.f32 %v625_v18, %v548_v8  ;;  %v343_v25 = vpop.f32.mrb[3].mxu0  ;;  %v359_v26 = vpop.f32.mrb[3].mxu1  ;;  %v389_v27 = vsel %vm373_vm1, %v349_v11, %v381_v19  ;;  %v393_v28 = vsel %vm377_vm2, %v365_v12, %v385_v20 }
  0xf0   : > { %v344_v29 = vadd.f32 %v548_v8, %v343_v25  ;;  %v360_v30 = vadd.f32 %v548_v8, %v359_v26  ;;  %v387_v35 = vsel %vm371_vm3, %v341_v15, %v379_v21  ;;  %v391_v36 = vsel %vm375_vm4, %v357_v16, %v383_v22 }
  0xf1   : > { %vm374_vm5 = vcmp.gt.f32.partialorder %v352_v23, 0.0  ;;  %v382_v31 = vmul.f32 0.2, %v352_v23  ;;  %vm378_vm6 = vcmp.gt.f32.partialorder %v368_v24, 0.0  ;;  %v386_v32 = vmul.f32 0.2, %v368_v24 }
  0xf2   : > { %vm372_vm7 = vcmp.gt.f32.partialorder %v344_v29, 0.0  ;;  %v380_v33 = vmul.f32 0.2, %v344_v29  ;;  %vm376_vm8 = vcmp.gt.f32.partialorder %v360_v30, 0.0  ;;  %v384_v34 = vmul.f32 0.2, %v360_v30 }
  0xf3   : > { %v390_v37 = vsel %vm374_vm5, %v352_v23, %v382_v31  ;;  %v394_v38 = vsel %vm378_vm6, %v368_v24, %v386_v32 }
  0xf4   : > { %v587_v39 = vpack.c.bf16 %v390_v37, %v389_v27  ;;  %v597_v40 = vpack.c.bf16 %v394_v38, %v393_v28  ;;  %v388_v41 = vsel %vm372_vm7, %v344_v29, %v380_v33  ;;  %v392_v42 = vsel %vm376_vm8, %v360_v30, %v384_v34 }
  0xf5   : > { %v582_v43 = vpack.c.bf16 %v388_v41, %v387_v35  ;;  %v592_v44 = vpack.c.bf16 %v392_v42, %v391_v36 }
  0xf6   : > { %599 = vst [vmem:[%s223_s6 + $0x8] sm:$0xff] %v587_v39   ;;  %601 = vst [vmem:[%s223_s6 + $0x18] sm:$0xff] %v597_v40  }
  0xf7   : > { %583 = vst [vmem:[%s223_s6] sm:$0xff] %v582_v43   ;;  %600 = vst [vmem:[%s223_s6 + $0x10] sm:$0xff] %v592_v44  }
  0xf8 PF: > { %s13_s14 = sadd.s32 1, %s688_s14   ;;  %s775_s12 = smov %s684_s13 }
  0xf9   : > { %p10_p5 = scmp.ge.s32.totalorder %s13_s14, 4   ;;  %s776_s13 = smov %s778_s15 }
  0xfb   :  { %12 = sbr.rel (!%p10_p5) target bundleno = 2 (0x2), region = 68 }

// kernel: discriminator_forward.5
= control target key start
LH: loop header
LB: loop body
LE: loop exit
PB: predicated region body
PF: predicated region fallthrough
CT: control target
= control target key end

     0   :  { %s2343_s12 = smov 0   ;;  %s2345_s13 = smov 0   ;;  %s2788_s0 = inlined_call_operand.vmem [shape: bf16[32,2048], index: 0, kind: input, shape index: {}]   ;;  %s2789_s1 = inlined_call_operand.vmem [shape: bf16[2048,128], index: 1, kind: input, shape index: {}]   ;;  %s2790_s2 = inlined_call_operand.vmem [shape: f32[1,128], index: 2, kind: input, shape index: {}]   ;;  %s2791_s3 = inlined_call_operand.vmem [shape: bf16[32,128], index: 3, kind: output, shape index: {}]  }
   0x1   :  { %s2347_s14 = smov 0  }
   0x2 LB: > { %s25_s15 = sadd.s32 1, %s2317_s13  ;;  %p1808_p0 = scmp.ge.s32.totalorder %s2321_s14, 1  ;;  %s2321_s14 = sphi %s2347_s14, %s13_s14   ;;  %s2317_s13 = sphi %s2345_s13, %s2793_s13   ;;  %s2313_s12 = sphi %s2343_s12, %s2792_s12  }
   0x3   : > { %p27_p1 = scmp.ge.s32.totalorder %s25_s15, 2  ;;  %p170_p2 = scmp.lt.s32.totalorder %s2321_s14, 3 }
   0x5   : > { %s2795_s15 = smov (%p27_p1, %s25_s15), 0  ;;  %p171_p3 = pnand %p1808_p0, %p170_p2 }
   0x6   : > { %v2171_v0 = vld [vmem:[%s2789_s1 + $0x40] sm:$0xff] (!%p171_p3)   ;;  %v2175_v4 = vld [vmem:[%s2789_s1 + $0x48] sm:$0xff] (!%p171_p3)   ;;  %v2179_v8 = vld [vmem:[%s2789_s1 + $0x50] sm:$0xff] (!%p171_p3)   ;;  %s1809_s25 = sshll.u32 (!%p171_p3), %s2313_s12, 1 }
   0x7   : > { %174 = sbr.rel (%p171_p3) target bundleno = 363 (0x16b), region = 32  ;;  %v2172_v1 = vld [vmem:[%s2789_s1 + $0xc0] sm:$0xff] (!%p171_p3)   ;;  %1971 = vmatprep.subr.bf16.mxu0 (!%p171_p3), %v2171_v0  ;;  %v2176_v5 = vld [vmem:[%s2789_s1 + $0xc8] sm:$0xff] (!%p171_p3)   ;;  %v2180_v9 = vld [vmem:[%s2789_s1 + $0xd0] sm:$0xff] (!%p171_p3)   ;;  %p206_p4 = scmp.lt.s32.totalorder (!%p171_p3), %s1809_s25, 3 }
   0x8   : > { %v2173_v2 = vld [vmem:[%s2789_s1] sm:$0xff] (!%p171_p3)   ;;  %1993 = vmatprep.subr.bf16.mxu1 (!%p171_p3), %v2172_v1  ;;  %v2177_v6 = vld [vmem:[%s2789_s1 + $0x8] sm:$0xff] (!%p171_p3)   ;;  %v2181_v10 = vld [vmem:[%s2789_s1 + $0x10] sm:$0xff] (!%p171_p3)  }
   0x9   : > { %v2174_v3 = vld [vmem:[%s2789_s1 + $0x80] sm:$0xff] (!%p171_p3)   ;;  %1972 = vmatpush3.bf16.msra.mxu0 (!%p171_p3), %v2173_v2  ;;  %v2178_v7 = vld [vmem:[%s2789_s1 + $0x88] sm:$0xff] (!%p171_p3)   ;;  %v2182_v11 = vld [vmem:[%s2789_s1 + $0x90] sm:$0xff] (!%p171_p3)  }
   0xa   : > { %1994 = vmatpush3.bf16.msra.mxu1 (!%p171_p3), %v2174_v3  ;;  %1973 = vmatprep.subr.bf16.mxu0 (!%p171_p3), %v2175_v4  ;;  %v2183_v12 = vld [vmem:[%s2789_s1 + $0x58] sm:$0xff] (!%p171_p3)   ;;  %v2187_v16 = vld [vmem:[%s2789_s1 + $0x60] sm:$0xff] (!%p171_p3)   ;;  %v2191_v20 = vld [vmem:[%s2789_s1 + $0x68] sm:$0xff] (!%p171_p3)  }
   0xb   : > { %1995 = vmatprep.subr.bf16.mxu1 (!%p171_p3), %v2176_v5  ;;  %v2184_v13 = vld [vmem:[%s2789_s1 + $0xd8] sm:$0xff] (!%p171_p3)   ;;  %v2188_v17 = vld [vmem:[%s2789_s1 + $0xe0] sm:$0xff] (!%p171_p3)   ;;  %v2192_v21 = vld [vmem:[%s2789_s1 + $0xe8] sm:$0xff] (!%p171_p3)  }
   0xc   : > { %v2185_v14 = vld [vmem:[%s2789_s1 + $0x18] sm:$0xff] (!%p171_p3)   ;;  %v2189_v18 = vld [vmem:[%s2789_s1 + $0x20] sm:$0xff] (!%p171_p3)   ;;  %v2193_v22 = vld [vmem:[%s2789_s1 + $0x28] sm:$0xff] (!%p171_p3)  }
   0xd   : > { %1974 = vmatpush3.bf16.msra.mxu0 (!%p171_p3), %v2177_v6  ;;  %v2186_v15 = vld [vmem:[%s2789_s1 + $0x98] sm:$0xff] (!%p171_p3)   ;;  %v2190_v19 = vld [vmem:[%s2789_s1 + $0xa0] sm:$0xff] (!%p171_p3)   ;;  %v2194_v23 = vld [vmem:[%s2789_s1 + $0xa8] sm:$0xff] (!%p171_p3)  }
   0xe   : > { %1996 = vmatpush3.bf16.msra.mxu1 %v2178_v7  ;;  %1975 = vmatprep.subr.bf16.mxu0 %v2179_v8  ;;  %s2797_s25 = smov (!%p206_p4, %s1809_s25), 3  ;;  %v2195_v24 = vld [vmem:[%s2789_s1 + $0x70] sm:$0xff]   ;;  %v2199_v28 = vld [vmem:[%s2789_s1 + $0x78] sm:$0xff]   ;;  %v2203_v40 = vld [vmem:[%s2789_s1 + $0x140] sm:$0xff]  }
   0xf   : > { %1997 = vmatprep.subr.bf16.mxu1 %v2180_v9  ;;  %v2196_v25 = vld [vmem:[%s2789_s1 + $0xf0] sm:$0xff]   ;;  %s1963_s24 = sshll.u32 %s2797_s25, 6  ;;  %v2200_v29 = vld [vmem:[%s2789_s1 + $0xf8] sm:$0xff]   ;;  %v2204_v41 = vld [vmem:[%s2789_s1 + $0x1c0] sm:$0xff]  }
  0x10   : > { %v2197_v26 = vld [vmem:[%s2789_s1 + $0x30] sm:$0xff]   ;;  %s2460_s12 = scalar_lea.vmem %s2788_s0, %s1963_s24  ;;  %v2201_v30 = vld [vmem:[%s2789_s1 + $0x38] sm:$0xff]   ;;  %v2205_v42 = vld [vmem:[%s2789_s1 + $0x100] sm:$0xff]  }
  0x11   : > { %1976 = vmatpush3.bf16.msra.mxu0 %v2181_v10  ;;  %v2198_v27 = vld [vmem:[%s2789_s1 + $0xb0] sm:$0xff]   ;;  %v2202_v31 = vld [vmem:[%s2789_s1 + $0xb8] sm:$0xff]   ;;  %v229_v32 = vld [vmem:[%s2460_s12] sm:$0xff] }
  0x12   : > { %1998 = vmatpush3.bf16.msra.mxu1 %v2182_v11  ;;  %1977 = vmatprep.subr.bf16.mxu0 %v2183_v12  ;;  %v237_v33 = vld [vmem:[%s2460_s12 + $0x40] sm:$0xff]  ;;  %v230_v34 = vld [vmem:[%s2460_s12 + $0x8] sm:$0xff]  ;;  %v2211_v48 = vld [vmem:[%s2789_s1 + $0x150] sm:$0xff]  }
  0x13   : > { %1999 = vmatprep.subr.bf16.mxu1 %v2184_v13  ;;  %v1815_v35 = vcombine.low %v229_v32, %v237_v33  ;;  %v1816_v36 = vcombine.high %v229_v32, %v237_v33  ;;  %v238_v37 = vld [vmem:[%s2460_s12 + $0x48] sm:$0xff]  ;;  %v2206_v43 = vld [vmem:[%s2789_s1 + $0x180] sm:$0xff]   ;;  %v2212_v49 = vld [vmem:[%s2789_s1 + $0x1d0] sm:$0xff]  }
  0x14   : > { %v1817_v38 = vcombine.low %v230_v34, %v238_v37  ;;  %v1818_v39 = vcombine.high %v230_v34, %v238_v37  ;;  %v2207_v44 = vld [vmem:[%s2789_s1 + $0x148] sm:$0xff]   ;;  %v2213_v50 = vld [vmem:[%s2789_s1 + $0x110] sm:$0xff]   ;;  %v2215_v52 = vld [vmem:[%s2789_s1 + $0x158] sm:$0xff]  }
  0x15   : > { %1978 = vmatpush3.bf16.msra.mxu0 %v2185_v14  ;;  %1388 = vmatprep.mubr.bf16.mxu0 %v1816_v36  ;;  %v2208_v45 = vld [vmem:[%s2789_s1 + $0x1c8] sm:$0xff]   ;;  %v2214_v51 = vld [vmem:[%s2789_s1 + $0x190] sm:$0xff]   ;;  %v2216_v53 = vld [vmem:[%s2789_s1 + $0x1d8] sm:$0xff]  }
  0x16   : > { %2000 = vmatpush3.bf16.msra.mxu1 %v2186_v15  ;;  %1979 = vmatprep.subr.bf16.mxu0 %v2187_v16  ;;  %v2209_v46 = vld [vmem:[%s2789_s1 + $0x108] sm:$0xff]   ;;  %v2217_v54 = vld [vmem:[%s2789_s1 + $0x118] sm:$0xff]   ;;  %v2219_v56 = vld [vmem:[%s2789_s1 + $0x160] sm:$0xff]  }
  0x17   : > { %2001 = vmatprep.subr.bf16.mxu1 %v2188_v17  ;;  %1429 = vmatprep.mubr.bf16.mxu1 %v1818_v39  ;;  %v2210_v47 = vld [vmem:[%s2789_s1 + $0x188] sm:$0xff]   ;;  %v2218_v55 = vld [vmem:[%s2789_s1 + $0x198] sm:$0xff]   ;;  %v2220_v57 = vld [vmem:[%s2789_s1 + $0x1e0] sm:$0xff]  }
  0x18   : > { %v2221_v58 = vld [vmem:[%s2789_s1 + $0x120] sm:$0xff]   ;;  %v2223_v60 = vld [vmem:[%s2789_s1 + $0x168] sm:$0xff]   ;;  %v2227_v0 = vld [vmem:[%s2789_s1 + $0x170] sm:$0xff]  }
  0x19   : > { %1980 = vmatpush3.bf16.msra.mxu0 %v2189_v18  ;;  %v2222_v59 = vld [vmem:[%s2789_s1 + $0x1a0] sm:$0xff]   ;;  %v2224_v61 = vld [vmem:[%s2789_s1 + $0x1e8] sm:$0xff]   ;;  %v2228_v1 = vld [vmem:[%s2789_s1 + $0x1f0] sm:$0xff]  }
  0x1a   : > { %2002 = vmatpush3.bf16.msra.mxu1 %v2190_v19  ;;  %1981 = vmatprep.subr.bf16.mxu0 %v2191_v20  ;;  %v2225_v62 = vld [vmem:[%s2789_s1 + $0x128] sm:$0xff]   ;;  %v2229_v2 = vld [vmem:[%s2789_s1 + $0x130] sm:$0xff]   ;;  %v2231_v4 = vld [vmem:[%s2789_s1 + $0x178] sm:$0xff]  }
  0x1b   : > { %2003 = vmatprep.subr.bf16.mxu1 %v2192_v21  ;;  %v2226_v63 = vld [vmem:[%s2789_s1 + $0x1a8] sm:$0xff]   ;;  %v2230_v3 = vld [vmem:[%s2789_s1 + $0x1b0] sm:$0xff]   ;;  %v2232_v5 = vld [vmem:[%s2789_s1 + $0x1f8] sm:$0xff]  }
  0x1c   : > { %v2233_v6 = vld [vmem:[%s2789_s1 + $0x138] sm:$0xff]   ;;  %v231_v8 = vld [vmem:[%s2460_s12 + $0x10] sm:$0xff]  ;;  %v2235_v16 = vld [vmem:[%s2789_s1 + $0x240] sm:$0xff]  }
  0x1d   : > { %1982 = vmatpush3.bf16.msra.mxu0 %v2193_v22  ;;  %v2234_v7 = vld [vmem:[%s2789_s1 + $0x1b8] sm:$0xff]   ;;  %v239_v9 = vld [vmem:[%s2460_s12 + $0x50] sm:$0xff]  ;;  %v2236_v17 = vld [vmem:[%s2789_s1 + $0x2c0] sm:$0xff]  }
  0x1e   : > { %2004 = vmatpush3.bf16.msra.mxu1 %v2194_v23  ;;  %1983 = vmatprep.subr.bf16.mxu0 %v2195_v24  ;;  %v1819_v10 = vcombine.low %v231_v8, %v239_v9  ;;  %v1820_v11 = vcombine.high %v231_v8, %v239_v9  ;;  %v232_v12 = vld [vmem:[%s2460_s12 + $0x18] sm:$0xff]  ;;  %v2237_v18 = vld [vmem:[%s2789_s1 + $0x200] sm:$0xff]   ;;  %v2239_v20 = vld [vmem:[%s2789_s1 + $0x248] sm:$0xff]  }
  0x1f   : > { %2005 = vmatprep.subr.bf16.mxu1 %v2196_v25  ;;  %v240_v13 = vld [vmem:[%s2460_s12 + $0x58] sm:$0xff]  ;;  %v2238_v19 = vld [vmem:[%s2789_s1 + $0x280] sm:$0xff]   ;;  %v2240_v21 = vld [vmem:[%s2789_s1 + $0x2c8] sm:$0xff]  }
  0x20   : > { %v1821_v14 = vcombine.low %v232_v12, %v240_v13  ;;  %v1822_v15 = vcombine.high %v232_v12, %v240_v13  ;;  %v2241_v22 = vld [vmem:[%s2789_s1 + $0x208] sm:$0xff]   ;;  %v2243_v24 = vld [vmem:[%s2789_s1 + $0x250] sm:$0xff]   ;;  %v2251_v32 = vld [vmem:[%s2789_s1 + $0x260] sm:$0xff]  }
  0x21   : > { %1984 = vmatpush3.bf16.msra.mxu0 %v2197_v26  ;;  %v2242_v23 = vld [vmem:[%s2789_s1 + $0x288] sm:$0xff]   ;;  %v2244_v25 = vld [vmem:[%s2789_s1 + $0x2d0] sm:$0xff]   ;;  %v2252_v33 = vld [vmem:[%s2789_s1 + $0x2e0] sm:$0xff]  }
  0x22   : > { %2006 = vmatpush3.bf16.msra.mxu1 %v2198_v27  ;;  %1985 = vmatprep.subr.bf16.mxu0 %v2199_v28  ;;  %v2245_v26 = vld [vmem:[%s2789_s1 + $0x210] sm:$0xff]   ;;  %v2247_v28 = vld [vmem:[%s2789_s1 + $0x258] sm:$0xff]   ;;  %v2253_v34 = vld [vmem:[%s2789_s1 + $0x220] sm:$0xff]  }
  0x23   : > { %2007 = vmatprep.subr.bf16.mxu1 %v2200_v29  ;;  %v2246_v27 = vld [vmem:[%s2789_s1 + $0x290] sm:$0xff]   ;;  %v2248_v29 = vld [vmem:[%s2789_s1 + $0x2d8] sm:$0xff]   ;;  %v2255_v36 = vld [vmem:[%s2789_s1 + $0x268] sm:$0xff]  }
  0x24   : > { %v2256_v37 = vld [vmem:[%s2789_s1 + $0x2e8] sm:$0xff]   ;;  %v2283_v8 = vld [vmem:[%s2789_s1 + $0x360] sm:$0xff]  }
  0x25   : > { %1986 = vmatpush3.bf16.msra.mxu0 %v2201_v30  ;;  %v2249_v30 = vld [vmem:[%s2789_s1 + $0x218] sm:$0xff]   ;;  %v2258_v39 = vld [vmem:[%s2789_s1 + $0x2a8] sm:$0xff]   ;;  %v2284_v9 = vld [vmem:[%s2789_s1 + $0x3e0] sm:$0xff]  }
  0x26   : > { %2008 = vmatpush3.bf16.msra.mxu1 %v2202_v31  ;;  %2015 = vmatprep.subr.bf16.mxu0 %v2203_v40  ;;  %v2250_v31 = vld [vmem:[%s2789_s1 + $0x298] sm:$0xff]   ;;  %v2259_v40 = vld [vmem:[%s2789_s1 + $0x270] sm:$0xff]   ;;  %v2287_v12 = vld [vmem:[%s2789_s1 + $0x368] sm:$0xff]  }
  0x27   : > { %2037 = vmatprep.subr.bf16.mxu1 %v2204_v41  ;;  %v2260_v41 = vld [vmem:[%s2789_s1 + $0x2f0] sm:$0xff]   ;;  %v2288_v13 = vld [vmem:[%s2789_s1 + $0x3e8] sm:$0xff]  }
  0x28   : > { %1389 = vmatmul.mubr.bf16.vlgmr.msra.gmra.mrb[0].mxu0 %v1815_v35  ;;  %v2254_v35 = vld [vmem:[%s2789_s1 + $0x2a0] sm:$0xff]  }
  0x29   : > { %1430 = vmatmul.mubr.bf16.vlgmr.msra.gmra.mrb[0].mxu1 %v1817_v38  ;;  %2016 = vmatpush3.bf16.msra.mxu0 %v2205_v42  ;;  %v2257_v38 = vld [vmem:[%s2789_s1 + $0x228] sm:$0xff]   ;;  %v2261_v42 = vld [vmem:[%s2789_s1 + $0x230] sm:$0xff]  }
  0x2a   : > { %2038 = vmatpush3.bf16.msra.mxu1 %v2206_v43  ;;  %2017 = vmatprep.subr.bf16.mxu0 %v2207_v44  ;;  %v2262_v43 = vld [vmem:[%s2789_s1 + $0x2b0] sm:$0xff]   ;;  %v2263_v44 = vld [vmem:[%s2789_s1 + $0x278] sm:$0xff]  }
  0x2b   : > { %2039 = vmatprep.subr.bf16.mxu1 %v2208_v45  ;;  %1470 = vmatprep.mubr.bf16.mxu0 %v1820_v11  ;;  %v2264_v45 = vld [vmem:[%s2789_s1 + $0x2f8] sm:$0xff]   ;;  %v2286_v11 = vld [vmem:[%s2789_s1 + $0x3a0] sm:$0xff]  }
  0x2c   : > { %1511 = vmatprep.mubr.bf16.mxu1 %v1822_v15  ;;  %v2290_v15 = vld [vmem:[%s2789_s1 + $0x3a8] sm:$0xff]  }
  0x2d   : > { %2018 = vmatpush3.bf16.msra.mxu0 %v2209_v46  ;;  %v2265_v46 = vld [vmem:[%s2789_s1 + $0x238] sm:$0xff]  }
  0x2e   : > { %2040 = vmatpush3.bf16.msra.mxu1 %v2210_v47  ;;  %2019 = vmatprep.subr.bf16.mxu0 %v2211_v48  ;;  %v2266_v47 = vld [vmem:[%s2789_s1 + $0x2b8] sm:$0xff]   ;;  %v233_v48 = vld [vmem:[%s2460_s12 + $0x20] sm:$0xff] }
  0x2f   : > { %2041 = vmatprep.subr.bf16.mxu1 %v2212_v49  ;;  %v241_v49 = vld [vmem:[%s2460_s12 + $0x60] sm:$0xff] }
  0x31   : > { %2020 = vmatpush3.bf16.msra.mxu0 %v2213_v50  ;;  %v234_v50 = vld [vmem:[%s2460_s12 + $0x28] sm:$0xff] }
  0x32   : > { %2042 = vmatpush3.bf16.msra.mxu1 %v2214_v51  ;;  %2021 = vmatprep.subr.bf16.mxu0 %v2215_v52  ;;  %v242_v51 = vld [vmem:[%s2460_s12 + $0x68] sm:$0xff]  ;;  %v1823_v52 = vcombine.low %v233_v48, %v241_v49 }
  0x33   : > { %2043 = vmatprep.subr.bf16.mxu1 %v2216_v53  ;;  %v1824_v53 = vcombine.high %v233_v48, %v241_v49 }
  0x35   : > { %2022 = vmatpush3.bf16.msra.mxu0 %v2217_v54  ;;  %v1825_v54 = vcombine.low %v234_v50, %v242_v51 }
  0x36   : > { %2044 = vmatpush3.bf16.msra.mxu1 %v2218_v55  ;;  %2023 = vmatprep.subr.bf16.mxu0 %v2219_v56  ;;  %v1826_v55 = vcombine.high %v234_v50, %v242_v51  ;;  %v2267_v56 = vld [vmem:[%s2789_s1 + $0x340] sm:$0xff]  }
  0x37   : > { %2045 = vmatprep.subr.bf16.mxu1 %v2220_v57  ;;  %v2268_v57 = vld [vmem:[%s2789_s1 + $0x3c0] sm:$0xff]  }
  0x39   : > { %2024 = vmatpush3.bf16.msra.mxu0 %v2221_v58  ;;  %v2269_v58 = vld [vmem:[%s2789_s1 + $0x300] sm:$0xff]  }
  0x3a   : > { %2046 = vmatpush3.bf16.msra.mxu1 %v2222_v59  ;;  %2025 = vmatprep.subr.bf16.mxu0 %v2223_v60  ;;  %v2270_v59 = vld [vmem:[%s2789_s1 + $0x380] sm:$0xff]   ;;  %v2271_v60 = vld [vmem:[%s2789_s1 + $0x348] sm:$0xff]  }
  0x3b   : > { %2047 = vmatprep.subr.bf16.mxu1 %v2224_v61  ;;  %v2272_v61 = vld [vmem:[%s2789_s1 + $0x3c8] sm:$0xff]  }
  0x3d   : > { %2026 = vmatpush3.bf16.msra.mxu0 %v2225_v62  ;;  %v2273_v62 = vld [vmem:[%s2789_s1 + $0x308] sm:$0xff]  }
  0x3e   : > { %2048 = vmatpush3.bf16.msra.mxu1 %v2226_v63  ;;  %2027 = vmatprep.subr.bf16.mxu0 %v2227_v0  ;;  %v2274_v63 = vld [vmem:[%s2789_s1 + $0x388] sm:$0xff]   ;;  %v2275_v0 = vld [vmem:[%s2789_s1 + $0x350] sm:$0xff]  }
  0x3f   : > { %2049 = vmatprep.subr.bf16.mxu1 %v2228_v1  ;;  %v2276_v1 = vld [vmem:[%s2789_s1 + $0x3d0] sm:$0xff]  }
  0x41   : > { %2028 = vmatpush3.bf16.msra.mxu0 %v2229_v2  ;;  %v2277_v2 = vld [vmem:[%s2789_s1 + $0x310] sm:$0xff]  }
  0x42   : > { %2050 = vmatpush3.bf16.msra.mxu1 %v2230_v3  ;;  %2029 = vmatprep.subr.bf16.mxu0 %v2231_v4  ;;  %v2278_v3 = vld [vmem:[%s2789_s1 + $0x390] sm:$0xff]   ;;  %v2279_v4 = vld [vmem:[%s2789_s1 + $0x358] sm:$0xff]  }
  0x43   : > { %2051 = vmatprep.subr.bf16.mxu1 %v2232_v5  ;;  %v2280_v5 = vld [vmem:[%s2789_s1 + $0x3d8] sm:$0xff]  }
  0x45   : > { %2030 = vmatpush3.bf16.msra.mxu0 %v2233_v6  ;;  %v2281_v6 = vld [vmem:[%s2789_s1 + $0x318] sm:$0xff]  }
  0x46   : > { %2052 = vmatpush3.bf16.msra.mxu1 %v2234_v7  ;;  %2059 = vmatprep.subr.bf16.mxu0 %v2235_v16  ;;  %v2282_v7 = vld [vmem:[%s2789_s1 + $0x398] sm:$0xff]   ;;  %v2291_v16 = vld [vmem:[%s2789_s1 + $0x370] sm:$0xff]  }
  0x47   : > { %2081 = vmatprep.subr.bf16.mxu1 %v2236_v17  ;;  %v2292_v17 = vld [vmem:[%s2789_s1 + $0x3f0] sm:$0xff]  }
  0x48   : > { %1471 = vmatmul.mubr.bf16.vlgmr.msra.gmra.mrb[4].mxu0 %v1819_v10  ;;  %v2285_v10 = vld [vmem:[%s2789_s1 + $0x320] sm:$0xff]  }
  0x49   : > { %1512 = vmatmul.mubr.bf16.vlgmr.msra.gmra.mrb[4].mxu1 %v1821_v14  ;;  %2060 = vmatpush3.bf16.msra.mxu0 %v2237_v18  ;;  %v2289_v14 = vld [vmem:[%s2789_s1 + $0x328] sm:$0xff]   ;;  %v2293_v18 = vld [vmem:[%s2789_s1 + $0x330] sm:$0xff]  }
  0x4a   : > { %2082 = vmatpush3.bf16.msra.mxu1 %v2238_v19  ;;  %2061 = vmatprep.subr.bf16.mxu0 %v2239_v20  ;;  %v2294_v19 = vld [vmem:[%s2789_s1 + $0x3b0] sm:$0xff]   ;;  %v2295_v20 = vld [vmem:[%s2789_s1 + $0x378] sm:$0xff]  }
  0x4b   : > { %2083 = vmatprep.subr.bf16.mxu1 %v2240_v21  ;;  %1552 = vmatprep.mubr.bf16.mxu0 %v1824_v53  ;;  %v2296_v21 = vld [vmem:[%s2789_s1 + $0x3f8] sm:$0xff]  }
  0x4c   : > { %1593 = vmatprep.mubr.bf16.mxu1 %v1826_v55 }
  0x4d   : > { %2062 = vmatpush3.bf16.msra.mxu0 %v2241_v22  ;;  %v2297_v22 = vld [vmem:[%s2789_s1 + $0x338] sm:$0xff]  }
  0x4e   : > { %2084 = vmatpush3.bf16.msra.mxu1 %v2242_v23  ;;  %2063 = vmatprep.subr.bf16.mxu0 %v2243_v24  ;;  %v2298_v23 = vld [vmem:[%s2789_s1 + $0x3b8] sm:$0xff]   ;;  %v235_v24 = vld [vmem:[%s2460_s12 + $0x30] sm:$0xff] }
  0x4f   : > { %2085 = vmatprep.subr.bf16.mxu1 %v2244_v25  ;;  %v243_v25 = vld [vmem:[%s2460_s12 + $0x70] sm:$0xff] }
  0x51   : > { %2064 = vmatpush3.bf16.msra.mxu0 %v2245_v26  ;;  %v236_v26 = vld [vmem:[%s2460_s12 + $0x38] sm:$0xff] }
  0x52   : > { %2086 = vmatpush3.bf16.msra.mxu1 %v2246_v27  ;;  %2065 = vmatprep.subr.bf16.mxu0 %v2247_v28  ;;  %v1827_v27 = vcombine.low %v235_v24, %v243_v25  ;;  %v1828_v28 = vcombine.high %v235_v24, %v243_v25 }
  0x53   : > { %2087 = vmatprep.subr.bf16.mxu1 %v2248_v29  ;;  %v244_v29 = vld [vmem:[%s2460_s12 + $0x78] sm:$0xff]  ;;  %s1813_s12 = sshll.u32 %s2797_s25, 2 }
  0x54   : > { %s226_s9 = scalar_lea.vmem %s2791_s3, %s1813_s12 }
  0x55   : > { %2066 = vmatpush3.bf16.msra.mxu0 %v2249_v30  ;;  %v1829_v30 = vcombine.low %v236_v26, %v244_v29 }
  0x56   : > { %2088 = vmatpush3.bf16.msra.mxu1 %v2250_v31  ;;  %2067 = vmatprep.subr.bf16.mxu0 %v2251_v32  ;;  %v1830_v31 = vcombine.high %v236_v26, %v244_v29 }
  0x57   : > { %2089 = vmatprep.subr.bf16.mxu1 %v2252_v33 }
  0x59   : > { %2068 = vmatpush3.bf16.msra.mxu0 %v2253_v34  ;;  %v1814_v34 = vld [vmem:[%s2790_s2] ss:$0 sm:$0xff] }
  0x5a   : > { %2090 = vmatpush3.bf16.msra.mxu1 %v2254_v35  ;;  %2069 = vmatprep.subr.bf16.mxu0 %v2255_v36 }
  0x5b   : > { %2091 = vmatprep.subr.bf16.mxu1 %v2256_v37 }
  0x5d   : > { %2070 = vmatpush3.bf16.msra.mxu0 %v2257_v38 }
  0x5e   : > { %2092 = vmatpush3.bf16.msra.mxu1 %v2258_v39  ;;  %2071 = vmatprep.subr.bf16.mxu0 %v2259_v40 }
  0x5f   : > { %2093 = vmatprep.subr.bf16.mxu1 %v2260_v41 }
  0x61   : > { %2072 = vmatpush3.bf16.msra.mxu0 %v2261_v42 }
  0x62   : > { %2094 = vmatpush3.bf16.msra.mxu1 %v2262_v43  ;;  %2073 = vmatprep.subr.bf16.mxu0 %v2263_v44 }
  0x63   : > { %2095 = vmatprep.subr.bf16.mxu1 %v2264_v45 }
  0x65   : > { %2074 = vmatpush3.bf16.msra.mxu0 %v2265_v46 }
  0x66   : > { %2096 = vmatpush3.bf16.msra.mxu1 %v2266_v47  ;;  %2103 = vmatprep.subr.bf16.mxu0 %v2267_v56 }
  0x67   : > { %2125 = vmatprep.subr.bf16.mxu1 %v2268_v57 }
  0x68   : > { %1553 = vmatmul.mubr.bf16.vlgmr.msra.gmra.mrb[8].mxu0 %v1823_v52 }
  0x69   : > { %1594 = vmatmul.mubr.bf16.vlgmr.msra.gmra.mrb[8].mxu1 %v1825_v54  ;;  %2104 = vmatpush3.bf16.msra.mxu0 %v2269_v58 }
  0x6a   : > { %2126 = vmatpush3.bf16.msra.mxu1 %v2270_v59  ;;  %2105 = vmatprep.subr.bf16.mxu0 %v2271_v60 }
  0x6b   : > { %2127 = vmatprep.subr.bf16.mxu1 %v2272_v61  ;;  %1634 = vmatprep.mubr.bf16.mxu0 %v1828_v28 }
  0x6c   : > { %1675 = vmatprep.mubr.bf16.mxu1 %v1830_v31 }
  0x6d   : > { %2106 = vmatpush3.bf16.msra.mxu0 %v2273_v62 }
  0x6e   : > { %2128 = vmatpush3.bf16.msra.mxu1 %v2274_v63  ;;  %2107 = vmatprep.subr.bf16.mxu0 %v2275_v0 }
  0x6f   : > { %2129 = vmatprep.subr.bf16.mxu1 %v2276_v1 }
  0x71   : > { %2108 = vmatpush3.bf16.msra.mxu0 %v2277_v2 }
  0x72   : > { %2130 = vmatpush3.bf16.msra.mxu1 %v2278_v3  ;;  %2109 = vmatprep.subr.bf16.mxu0 %v2279_v4 }
  0x73   : > { %2131 = vmatprep.subr.bf16.mxu1 %v2280_v5 }
  0x75   : > { %2110 = vmatpush3.bf16.msra.mxu0 %v2281_v6 }
  0x76   : > { %2132 = vmatpush3.bf16.msra.mxu1 %v2282_v7  ;;  %2111 = vmatprep.subr.bf16.mxu0 %v2283_v8 }
  0x77   : > { %2133 = vmatprep.subr.bf16.mxu1 %v2284_v9 }
  0x79   : > { %2112 = vmatpush3.bf16.msra.mxu0 %v2285_v10 }
  0x7a   : > { %2134 = vmatpush3.bf16.msra.mxu1 %v2286_v11  ;;  %2113 = vmatprep.subr.bf16.mxu0 %v2287_v12 }
  0x7b   : > { %2135 = vmatprep.subr.bf16.mxu1 %v2288_v13 }
  0x7d   : > { %2114 = vmatpush3.bf16.msra.mxu0 %v2289_v14 }
  0x7e   : > { %2136 = vmatpush3.bf16.msra.mxu1 %v2290_v15  ;;  %2115 = vmatprep.subr.bf16.mxu0 %v2291_v16 }
  0x7f   : > { %2137 = vmatprep.subr.bf16.mxu1 %v2292_v17 }
  0x81   : > { %2116 = vmatpush3.bf16.msra.mxu0 %v2293_v18 }
  0x82   : > { %2138 = vmatpush3.bf16.msra.mxu1 %v2294_v19  ;;  %2117 = vmatprep.subr.bf16.mxu0 %v2295_v20 }
  0x83   : > { %2139 = vmatprep.subr.bf16.mxu1 %v2296_v21 }
  0x85   : > { %2118 = vmatpush3.bf16.msra.mxu0 %v2297_v22 }
  0x86   : > { %2140 = vmatpush3.bf16.msra.mxu1 %v2298_v23 }
  0x88   : > { %1635 = vmatmul.mubr.bf16.vlgmr.msra.gmra.mrb[12].mxu0 %v1827_v27 }
  0x89   : > { %1676 = vmatmul.mubr.bf16.vlgmr.msra.gmra.mrb[12].mxu1 %v1829_v30 }
  0xfb   : > { %v1987_v32 = vpop.f32.mrb[0].mxu0 }
  0xfc   : > { %v2009_v33 = vpop.f32.mrb[0].mxu1  ;;  %v1988_v35 = vpop.f32.mrb[1].mxu0 }
  0xfd   : > { %v1989_v36 = vadd.f32 %v1988_v35, %v1987_v32  ;;  %v2010_v37 = vpop.f32.mrb[1].mxu1  ;;  %v1990_v38 = vpop.f32.mrb[2].mxu0 }
  0xfe   : > { %v2011_v39 = vadd.f32 %v2010_v37, %v2009_v33  ;;  %v2012_v40 = vpop.f32.mrb[2].mxu1  ;;  %v1991_v41 = vpop.f32.mrb[3].mxu0 }
  0xff   : > { %v1391_v42 = vadd.f32 %v1989_v36, %v1814_v34  ;;  %v1992_v43 = vadd.f32 %v1991_v41, %v1990_v38  ;;  %v2013_v44 = vpop.f32.mrb[3].mxu1 }
 0x100   : > { %v2014_v45 = vadd.f32 %v2013_v44, %v2012_v40 }
 0x101   : > { %v1432_v46 = vadd.f32 %v2011_v39, %v1391_v42  ;;  %v1394_v47 = vadd.f32 %v1992_v43, %v1814_v34 }
 0x103   : > { %v1435_v48 = vadd.f32 %v2014_v45, %v1394_v47 }
 0x11b   : > { %v2031_v49 = vpop.f32.mrb[4].mxu0 }
 0x11c   : > { %v2053_v50 = vpop.f32.mrb[4].mxu1  ;;  %v2032_v51 = vpop.f32.mrb[5].mxu0 }
 0x11d   : > { %v2033_v52 = vadd.f32 %v2032_v51, %v2031_v49  ;;  %v2054_v53 = vpop.f32.mrb[5].mxu1  ;;  %v2034_v54 = vpop.f32.mrb[6].mxu0 }
 0x11e   : > { %v2055_v55 = vadd.f32 %v2054_v53, %v2053_v50  ;;  %v2056_v56 = vpop.f32.mrb[6].mxu1  ;;  %v2035_v57 = vpop.f32.mrb[7].mxu0 }
 0x11f   : > { %v1473_v58 = vadd.f32 %v2033_v52, %v1432_v46  ;;  %v2036_v59 = vadd.f32 %v2035_v57, %v2034_v54  ;;  %v2057_v60 = vpop.f32.mrb[7].mxu1 }
 0x120   : > { %v2058_v61 = vadd.f32 %v2057_v60, %v2056_v56 }
 0x121   : > { %v1514_v62 = vadd.f32 %v2055_v55, %v1473_v58  ;;  %v1476_v63 = vadd.f32 %v2036_v59, %v1435_v48 }
 0x123   : > { %v1517_v0 = vadd.f32 %v2058_v61, %v1476_v63 }
 0x13b   : > { %v2075_v1 = vpop.f32.mrb[8].mxu0 }
 0x13c   : > { %v2097_v2 = vpop.f32.mrb[8].mxu1  ;;  %v2076_v3 = vpop.f32.mrb[9].mxu0 }
 0x13d   : > { %v2098_v4 = vpop.f32.mrb[9].mxu1  ;;  %v2077_v5 = vadd.f32 %v2076_v3, %v2075_v1  ;;  %v2078_v7 = vpop.f32.mrb[10].mxu0 }
 0x13e   : > { %v2099_v6 = vadd.f32 %v2098_v4, %v2097_v2  ;;  %v2100_v8 = vpop.f32.mrb[10].mxu1  ;;  %v2079_v9 = vpop.f32.mrb[11].mxu0 }
 0x13f   : > { %v2101_v10 = vpop.f32.mrb[11].mxu1  ;;  %v1555_v11 = vadd.f32 %v2077_v5, %v1514_v62  ;;  %v2080_v12 = vadd.f32 %v2079_v9, %v2078_v7 }
 0x140   : > { %v2102_v13 = vadd.f32 %v2101_v10, %v2100_v8 }
 0x141   : > { %v1596_v14 = vadd.f32 %v2099_v6, %v1555_v11  ;;  %v1558_v15 = vadd.f32 %v2080_v12, %v1517_v0 }
 0x143   : > { %v1599_v16 = vadd.f32 %v2102_v13, %v1558_v15 }
 0x15b   : > { %v2119_v17 = vpop.f32.mrb[12].mxu0 }
 0x15c   : > { %v2141_v18 = vpop.f32.mrb[12].mxu1  ;;  %v2120_v19 = vpop.f32.mrb[13].mxu0 }
 0x15d   : > { %v2121_v20 = vadd.f32 %v2120_v19, %v2119_v17  ;;  %v2142_v21 = vpop.f32.mrb[13].mxu1  ;;  %v2122_v22 = vpop.f32.mrb[14].mxu0 }
 0x15e   : > { %v2143_v23 = vadd.f32 %v2142_v21, %v2141_v18  ;;  %v2144_v24 = vpop.f32.mrb[14].mxu1  ;;  %v2123_v25 = vpop.f32.mrb[15].mxu0 }
 0x15f   : > { %v1637_v26 = vadd.f32 %v2121_v20, %v1596_v14  ;;  %v2124_v27 = vadd.f32 %v2123_v25, %v2122_v22  ;;  %v2145_v28 = vpop.f32.mrb[15].mxu1 }
 0x160   : > { %v2146_v29 = vadd.f32 %v2145_v28, %v2144_v24 }
 0x161   : > { %v1678_v30 = vadd.f32 %v2143_v23, %v1637_v26  ;;  %v1640_v31 = vadd.f32 %v2124_v27, %v1599_v16 }
 0x163   : > { %v1686_v32 = vmul.f32 0.2, %v1678_v30  ;;  %v1681_v33 = vadd.f32 %v2146_v29, %v1640_v31  ;;  %vm1684_vm0 = vcmp.gt.f32.partialorder %v1678_v30, 0.0 }
 0x165   : > { %vm1685_vm1 = vcmp.gt.f32.partialorder %v1681_v33, 0.0  ;;  %v1687_v34 = vmul.f32 0.2, %v1681_v33  ;;  %v1688_v35 = vsel %vm1684_vm0, %v1678_v30, %v1686_v32 }
 0x167   : > { %v1689_v36 = vsel %vm1685_vm1, %v1681_v33, %v1687_v34 }
 0x168   : > { %v1969_v37 = vpack.c.bf16 %v1689_v36, %v1688_v35 }
 0x16a   : > { %1970 = vst [vmem:[%s226_s9] sm:$0xff] %v1969_v37  }
 0x16b PF: > { %s13_s14 = sadd.s32 1, %s2321_s14   ;;  %s2792_s12 = smov %s2317_s13 }
 0x16c   : > { %p10_p5 = scmp.ge.s32.totalorder %s13_s14, 4   ;;  %s2793_s13 = smov %s2795_s15 }
 0x16e   :  { %12 = sbr.rel (!%p10_p5) target bundleno = 2 (0x2), region = 68 }

// kernel: discriminator_forward.7
= control target key start
LH: loop header
LB: loop body
LE: loop exit
PB: predicated region body
PF: predicated region fallthrough
CT: control target
= control target key end

     0   :  { %v987_v22 = vmov 1966171168   ;;  %v156_v24 = vlaneseq  ;;  %s1222_s1 = inlined_call_operand.vmem [shape: bf16[1024,128], index: 1, kind: input, shape index: {}]   ;;  %s1223_s0 = inlined_call_operand.vmem [shape: bf16[2,1024], index: 0, kind: input, shape index: {}]   ;;  %s1224_s2 = inlined_call_operand.vmem [shape: f32[1,128], index: 2, kind: input, shape index: {}]   ;;  %s1225_s3 = inlined_call_operand.vmem [shape: f32[2,128], index: 3, kind: output, shape index: {}]  }
   0x1   :  { %v918_v0 = vld [vmem:[%s1222_s1 + $0x40] sm:$0xff]   ;;  %v922_v4 = vld [vmem:[%s1222_s1 + $0x48] sm:$0xff]   ;;  %v926_v8 = vld [vmem:[%s1222_s1 + $0x50] sm:$0xff]   ;;  %v154_v23 = vunpack.c.l.s4 %v987_v22 }
   0x2   :  { %v919_v1 = vld [vmem:[%s1222_s1 + $0xc0] sm:$0xff]   ;;  %829 = vmatprep.subr.bf16.mxu0 %v918_v0  ;;  %v923_v5 = vld [vmem:[%s1222_s1 + $0xc8] sm:$0xff]   ;;  %v927_v9 = vld [vmem:[%s1222_s1 + $0xd0] sm:$0xff]   ;;  %v157_v30 = vshrl.u32 %v156_v24, 7 }
   0x3   :  { %v920_v2 = vld [vmem:[%s1222_s1] sm:$0xff]   ;;  %851 = vmatprep.subr.bf16.mxu1 %v919_v1  ;;  %v924_v6 = vld [vmem:[%s1222_s1 + $0x8] sm:$0xff]   ;;  %v928_v10 = vld [vmem:[%s1222_s1 + $0x10] sm:$0xff]   ;;  %v155_v29 = vunpack.c.0.s8 %v154_v23 }
   0x4   :  { %v921_v3 = vld [vmem:[%s1222_s1 + $0x80] sm:$0xff]   ;;  %830 = vmatpush3.bf16.msra.mxu0 %v920_v2  ;;  %v925_v7 = vld [vmem:[%s1222_s1 + $0x88] sm:$0xff]   ;;  %v929_v11 = vld [vmem:[%s1222_s1 + $0x90] sm:$0xff]  }
   0x5   :  { %852 = vmatpush3.bf16.msra.mxu1 %v921_v3  ;;  %831 = vmatprep.subr.bf16.mxu0 %v922_v4  ;;  %v930_v12 = vld [vmem:[%s1222_s1 + $0x58] sm:$0xff]   ;;  %v934_v16 = vld [vmem:[%s1222_s1 + $0x60] sm:$0xff]   ;;  %v938_v20 = vld [vmem:[%s1222_s1 + $0x68] sm:$0xff]   ;;  %v1098_v35 = vsub.s32 %v155_v29, %v157_v30 }
   0x6   :  { %853 = vmatprep.subr.bf16.mxu1 %v923_v5  ;;  %v931_v13 = vld [vmem:[%s1222_s1 + $0xd8] sm:$0xff]   ;;  %v935_v17 = vld [vmem:[%s1222_s1 + $0xe0] sm:$0xff]   ;;  %v939_v21 = vld [vmem:[%s1222_s1 + $0xe8] sm:$0xff]  }
   0x7   :  { %v932_v14 = vld [vmem:[%s1222_s1 + $0x18] sm:$0xff]   ;;  %v936_v18 = vld [vmem:[%s1222_s1 + $0x20] sm:$0xff]   ;;  %v940_v25 = vld [vmem:[%s1222_s1 + $0x28] sm:$0xff]  }
   0x8   :  { %832 = vmatpush3.bf16.msra.mxu0 %v924_v6  ;;  %v933_v15 = vld [vmem:[%s1222_s1 + $0x98] sm:$0xff]   ;;  %v937_v19 = vld [vmem:[%s1222_s1 + $0xa0] sm:$0xff]   ;;  %v941_v26 = vld [vmem:[%s1222_s1 + $0xa8] sm:$0xff]  }
   0x9   :  { %854 = vmatpush3.bf16.msra.mxu1 %v925_v7  ;;  %833 = vmatprep.subr.bf16.mxu0 %v926_v8  ;;  %v942_v27 = vld [vmem:[%s1222_s1 + $0x70] sm:$0xff]   ;;  %v946_v33 = vld [vmem:[%s1222_s1 + $0x78] sm:$0xff]   ;;  %v15_v38 = vld [vmem:[%s1223_s0] sm:$0xff] }
   0xa   :  { %855 = vmatprep.subr.bf16.mxu1 %v927_v9  ;;  %v943_v28 = vld [vmem:[%s1222_s1 + $0xf0] sm:$0xff]   ;;  %v947_v34 = vld [vmem:[%s1222_s1 + $0xf8] sm:$0xff]   ;;  %v152_v39 = vcombine.high %v15_v38, %v15_v38  ;;  %v159_v40 = vrot.slane %v15_v38, %v1098_v35  ;;  %v951_v41 = vld [vmem:[%s1222_s1 + $0x140] sm:$0xff]  }
   0xb   :  { %v944_v31 = vld [vmem:[%s1222_s1 + $0x30] sm:$0xff]   ;;  %v948_v36 = vld [vmem:[%s1222_s1 + $0x38] sm:$0xff]   ;;  %v952_v42 = vld [vmem:[%s1222_s1 + $0x1c0] sm:$0xff]  }
   0xc   :  { %834 = vmatpush3.bf16.msra.mxu0 %v928_v10  ;;  %v945_v32 = vld [vmem:[%s1222_s1 + $0xb0] sm:$0xff]   ;;  %v949_v37 = vld [vmem:[%s1222_s1 + $0xb8] sm:$0xff]   ;;  %v167_v43 = vcombine.high %v159_v40, %v159_v40  ;;  %v175_v44 = vrot.slane %v159_v40, %v1098_v35  ;;  %v1118_v45 = vrot.slane %v152_v39, %v1098_v35  ;;  %v953_v47 = vld [vmem:[%s1222_s1 + $0x100] sm:$0xff]  }
   0xd   :  { %856 = vmatpush3.bf16.msra.mxu1 %v929_v11  ;;  %835 = vmatprep.subr.bf16.mxu0 %v930_v12  ;;  %v955_v50 = vld [vmem:[%s1222_s1 + $0x148] sm:$0xff]   ;;  %v954_v52 = vld [vmem:[%s1222_s1 + $0x180] sm:$0xff]   ;;  %v959_v57 = vld [vmem:[%s1222_s1 + $0x150] sm:$0xff]  }
   0xe   :  { %857 = vmatprep.subr.bf16.mxu1 %v931_v13  ;;  %v189_v46 = vrot.slane %v167_v43, %v1098_v35  ;;  %v168_v48 = vcombine.high %v1118_v45, %v1118_v45  ;;  %v197_v49 = vcombine.high %v175_v44, %v175_v44  ;;  %v956_v54 = vld [vmem:[%s1222_s1 + $0x1c8] sm:$0xff]   ;;  %v960_v59 = vld [vmem:[%s1222_s1 + $0x1d0] sm:$0xff]   ;;  %v963_v61 = vld [vmem:[%s1222_s1 + $0x158] sm:$0xff]  }
   0xf   :  { %v957_v55 = vld [vmem:[%s1222_s1 + $0x108] sm:$0xff]   ;;  %v961_v60 = vld [vmem:[%s1222_s1 + $0x110] sm:$0xff]   ;;  %v964_v63 = vld [vmem:[%s1222_s1 + $0x1d8] sm:$0xff]  }
  0x10   :  { %836 = vmatpush3.bf16.msra.mxu0 %v932_v14  ;;  %625 = vmatprep.mubr.bf16.mxu0 %v189_v46  ;;  %v199_v51 = vcombine.high %v189_v46, %v189_v46  ;;  %v196_v53 = vrot.slane %v168_v48, %v1098_v35  ;;  %v958_v58 = vld [vmem:[%s1222_s1 + $0x188] sm:$0xff]   ;;  %v962_v62 = vld [vmem:[%s1222_s1 + $0x190] sm:$0xff]   ;;  %v965_v0 = vld [vmem:[%s1222_s1 + $0x118] sm:$0xff]  }
  0x11   :  { %858 = vmatpush3.bf16.msra.mxu1 %v933_v15  ;;  %837 = vmatprep.subr.bf16.mxu0 %v934_v16  ;;  %v967_v1 = vld [vmem:[%s1222_s1 + $0x160] sm:$0xff]   ;;  %v966_v2 = vld [vmem:[%s1222_s1 + $0x198] sm:$0xff]   ;;  %v971_v5 = vld [vmem:[%s1222_s1 + $0x168] sm:$0xff]  }
  0x12   :  { %859 = vmatprep.subr.bf16.mxu1 %v935_v17  ;;  %665 = vmatprep.mubr.bf16.mxu1 %v199_v51  ;;  %v200_v56 = vcombine.high %v196_v53, %v196_v53  ;;  %v968_v3 = vld [vmem:[%s1222_s1 + $0x1e0] sm:$0xff]   ;;  %v972_v7 = vld [vmem:[%s1222_s1 + $0x1e8] sm:$0xff]   ;;  %v975_v9 = vld [vmem:[%s1222_s1 + $0x170] sm:$0xff]   ;;  %v182_v17 = vrot.slane %v1118_v45, %v1098_v35 }
  0x13   :  { %v969_v4 = vld [vmem:[%s1222_s1 + $0x120] sm:$0xff]   ;;  %v973_v8 = vld [vmem:[%s1222_s1 + $0x128] sm:$0xff]   ;;  %v976_v11 = vld [vmem:[%s1222_s1 + $0x1f0] sm:$0xff]  }
  0x14   :  { %838 = vmatpush3.bf16.msra.mxu0 %v936_v18  ;;  %v970_v6 = vld [vmem:[%s1222_s1 + $0x1a0] sm:$0xff]   ;;  %v974_v10 = vld [vmem:[%s1222_s1 + $0x1a8] sm:$0xff]   ;;  %v977_v12 = vld [vmem:[%s1222_s1 + $0x130] sm:$0xff]  }
  0x15   :  { %860 = vmatpush3.bf16.msra.mxu1 %v937_v19  ;;  %839 = vmatprep.subr.bf16.mxu0 %v938_v20  ;;  %v979_v13 = vld [vmem:[%s1222_s1 + $0x178] sm:$0xff]   ;;  %v978_v14 = vld [vmem:[%s1222_s1 + $0x1b0] sm:$0xff]   ;;  %v198_v19 = vcombine.high %v182_v17, %v182_v17 }
  0x16   :  { %861 = vmatprep.subr.bf16.mxu1 %v939_v21  ;;  %v980_v15 = vld [vmem:[%s1222_s1 + $0x1f8] sm:$0xff]   ;;  %v764_v21 = vld [vmem:[%s1224_s2] ss:$0 sm:$0xff] }
  0x17   :  { %v981_v16 = vld [vmem:[%s1222_s1 + $0x138] sm:$0xff]  }
  0x18   :  { %840 = vmatpush3.bf16.msra.mxu0 %v940_v25  ;;  %v982_v18 = vld [vmem:[%s1222_s1 + $0x1b8] sm:$0xff]  }
  0x19   :  { %862 = vmatpush3.bf16.msra.mxu1 %v941_v26  ;;  %841 = vmatprep.subr.bf16.mxu0 %v942_v27 }
  0x1a   :  { %863 = vmatprep.subr.bf16.mxu1 %v943_v28 }
  0x1c   :  { %842 = vmatpush3.bf16.msra.mxu0 %v944_v31 }
  0x1d   :  { %864 = vmatpush3.bf16.msra.mxu1 %v945_v32  ;;  %843 = vmatprep.subr.bf16.mxu0 %v946_v33 }
  0x1e   :  { %865 = vmatprep.subr.bf16.mxu1 %v947_v34 }
  0x20   :  { %844 = vmatpush3.bf16.msra.mxu0 %v948_v36 }
  0x21   :  { %866 = vmatpush3.bf16.msra.mxu1 %v949_v37  ;;  %873 = vmatprep.subr.bf16.mxu0 %v951_v41 }
  0x22   :  { %895 = vmatprep.subr.bf16.mxu1 %v952_v42 }
  0x23   :  { %626 = vmatmul.mubr.bf16.vlgmr.msra.gmra.mrb[0].mxu0 %v175_v44 }
  0x24   :  { %874 = vmatpush3.bf16.msra.mxu0 %v953_v47  ;;  %666 = vmatmul.mubr.bf16.vlgmr.msra.gmra.mrb[0].mxu1 %v197_v49 }
  0x25   :  { %875 = vmatprep.subr.bf16.mxu0 %v955_v50  ;;  %896 = vmatpush3.bf16.msra.mxu1 %v954_v52 }
  0x26   :  { %705 = vmatprep.mubr.bf16.mxu0 %v196_v53  ;;  %897 = vmatprep.subr.bf16.mxu1 %v956_v54 }
  0x27   :  { %745 = vmatprep.mubr.bf16.mxu1 %v200_v56 }
  0x28   :  { %876 = vmatpush3.bf16.msra.mxu0 %v957_v55 }
  0x29   :  { %877 = vmatprep.subr.bf16.mxu0 %v959_v57  ;;  %898 = vmatpush3.bf16.msra.mxu1 %v958_v58 }
  0x2a   :  { %899 = vmatprep.subr.bf16.mxu1 %v960_v59 }
  0x2c   :  { %878 = vmatpush3.bf16.msra.mxu0 %v961_v60 }
  0x2d   :  { %879 = vmatprep.subr.bf16.mxu0 %v963_v61  ;;  %900 = vmatpush3.bf16.msra.mxu1 %v962_v62 }
  0x2e   :  { %901 = vmatprep.subr.bf16.mxu1 %v964_v63 }
  0x30   :  { %880 = vmatpush3.bf16.msra.mxu0 %v965_v0 }
  0x31   :  { %881 = vmatprep.subr.bf16.mxu0 %v967_v1  ;;  %902 = vmatpush3.bf16.msra.mxu1 %v966_v2 }
  0x32   :  { %903 = vmatprep.subr.bf16.mxu1 %v968_v3 }
  0x34   :  { %882 = vmatpush3.bf16.msra.mxu0 %v969_v4 }
  0x35   :  { %883 = vmatprep.subr.bf16.mxu0 %v971_v5  ;;  %904 = vmatpush3.bf16.msra.mxu1 %v970_v6 }
  0x36   :  { %905 = vmatprep.subr.bf16.mxu1 %v972_v7 }
  0x38   :  { %884 = vmatpush3.bf16.msra.mxu0 %v973_v8 }
  0x39   :  { %885 = vmatprep.subr.bf16.mxu0 %v975_v9  ;;  %906 = vmatpush3.bf16.msra.mxu1 %v974_v10 }
  0x3a   :  { %907 = vmatprep.subr.bf16.mxu1 %v976_v11 }
  0x3c   :  { %886 = vmatpush3.bf16.msra.mxu0 %v977_v12 }
  0x3d   :  { %887 = vmatprep.subr.bf16.mxu0 %v979_v13  ;;  %908 = vmatpush3.bf16.msra.mxu1 %v978_v14 }
  0x3e   :  { %909 = vmatprep.subr.bf16.mxu1 %v980_v15 }
  0x40   :  { %888 = vmatpush3.bf16.msra.mxu0 %v981_v16 }
  0x41   :  { %910 = vmatpush3.bf16.msra.mxu1 %v982_v18 }
  0x43   :  { %706 = vmatmul.mubr.bf16.vlgmr.msra.gmra.mrb[4].mxu0 %v182_v17 }
  0x44   :  { %746 = vmatmul.mubr.bf16.vlgmr.msra.gmra.mrb[4].mxu1 %v198_v19 }
  0xf6   :  { %v845_v20 = vpop.f32.mrb[0].mxu0 }
  0xf7   :  { %v846_v22 = vpop.f32.mrb[1].mxu0  ;;  %v867_v23 = vpop.f32.mrb[0].mxu1 }
  0xf8   :  { %v847_v24 = vadd.f32 %v846_v22, %v845_v20  ;;  %v848_v25 = vpop.f32.mrb[2].mxu0  ;;  %v868_v26 = vpop.f32.mrb[1].mxu1 }
  0xf9   :  { %v849_v27 = vpop.f32.mrb[3].mxu0  ;;  %v869_v29 = vadd.f32 %v868_v26, %v867_v23  ;;  %v870_v30 = vpop.f32.mrb[2].mxu1 }
  0xfa   :  { %v628_v28 = vadd.f32 %v847_v24, %v764_v21  ;;  %v871_v31 = vpop.f32.mrb[3].mxu1 }
  0xfc   :  { %v668_v32 = vadd.f32 %v869_v29, %v628_v28 }
 0x116   :  { %v889_v33 = vpop.f32.mrb[4].mxu0 }
 0x117   :  { %v890_v34 = vpop.f32.mrb[5].mxu0  ;;  %v911_v35 = vpop.f32.mrb[4].mxu1 }
 0x118   :  { %v891_v36 = vadd.f32 %v890_v34, %v889_v33  ;;  %v892_v37 = vpop.f32.mrb[6].mxu0  ;;  %v912_v38 = vpop.f32.mrb[5].mxu1 }
 0x119   :  { %v893_v39 = vpop.f32.mrb[7].mxu0  ;;  %v913_v41 = vadd.f32 %v912_v38, %v911_v35  ;;  %v914_v42 = vpop.f32.mrb[6].mxu1 }
 0x11a   :  { %v708_v40 = vadd.f32 %v891_v36, %v668_v32  ;;  %v915_v43 = vpop.f32.mrb[7].mxu1 }
 0x11c   :  { %v748_v44 = vadd.f32 %v913_v41, %v708_v40 }
 0x11e   :  { %v753_v45 = vsub.f32 0.0, %v748_v44 }
 0x120   :  { %v754_v46 = vmul.f32 1.442695, %v753_v45 }
 0x122   :  { %983 = vpow2.f32 %v754_v46 }
 0x12c   :  { %v984_v47 = vpop.eup %983 }
 0x12d   :  { %v756_v48 = vadd.f32 1.0, %v984_v47 }
 0x12f   :  { %985 = vrcp.f32 %v756_v48 }
 0x139   :  { %v986_v49 = vpop.eup %985 }
 0x13a   :  { %759 = vst [vmem:[%s1225_s3] sm:$0x3] %v986_v49 }

// kernel: discriminator_forward.6
= control target key start
LH: loop header
LB: loop body
LE: loop exit
PB: predicated region body
PF: predicated region fallthrough
CT: control target
= control target key end

     0   :  { %s3392_s12 = smov 0   ;;  %s3394_s13 = smov 0   ;;  %s4171_s0 = inlined_call_operand.vmem [shape: bf16[8,2048], index: 0, kind: input, shape index: {}]   ;;  %s4172_s1 = inlined_call_operand.vmem [shape: bf16[2048,256], index: 1, kind: input, shape index: {}]   ;;  %s4173_s2 = inlined_call_operand.vmem [shape: f32[1,256], index: 2, kind: input, shape index: {}]   ;;  %s4174_s3 = inlined_call_operand.vmem [shape: bf16[8,256], index: 3, kind: output, shape index: {}]  }
   0x1   :  { %s3396_s14 = smov 0   ;;  %s3398_s15 = smov 0  }
   0x2   :  { %s3400_s16 = smov 0  }
   0x3 LB: > { %s22_s17 = sadd.s32 1, %s3366_s15  ;;  %p65_p1 = scmp.ne.s32.totalorder %s3358_s13, %s3354_s12  ;;  %s3370_s16 = sphi %s3400_s16, %s13_s16   ;;  %s3366_s15 = sphi %s3398_s15, %s4178_s15   ;;  %s3362_s14 = sphi %s3396_s14, %s4177_s14   ;;  %s3358_s13 = sphi %s3394_s13, %s4176_s13   ;;  %s3354_s12 = sphi %s3392_s12, %s4175_s12  }
   0x4   : > { %p23_p0 = scmp.ge.s32.totalorder %s22_s17, 2  ;;  %p66_p2 = scmp.eq.s32.totalorder %s3370_s16, 0 }
   0x5   : > { %s58_s19 = sadd.s32 1, %s3358_s13  ;;  %p2819_p5 = scmp.ge.s32.totalorder %s3370_s16, 2 }
   0x6   : > { %s4180_s17 = smov (%p23_p0, %s22_s17), 0  ;;  %p67_p3 = por %p66_p2, %p65_p1 }
   0x7   : > { %s55_s18 = ssub.s32 %s3366_s15, %s4180_s17  ;;  %153 = sbr.rel (%p2819_p5) target bundleno = 188 (0xbc), region = 20 }
   0x8   : > { %p56_p4 = scmp.eq.s32.totalorder %s55_s18, 0 }
   0xa   : > { %s3427_s20 = scalar_select %p56_p4, %s3358_s13, %s58_s19  }
   0xe   : > { %156 = sbr.rel (!%p67_p3) target bundleno = 188 (0xbc), region = 24  ;;  %s158_s21 = sand.u32 (%p67_p3), 1, %s3358_s13  }
   0xf   : > { %s2821_s22 = sshll.u32 (%p67_p3), %s3366_s15, 2  ;;  %s2820_s23 = sshll.u32 (%p67_p3), %s158_s21, 10 }
  0x10   : > { %s3435_s26 = scalar_lea.vmem (%p67_p3), %s4172_s1, %s2821_s22  ;;  %s3439_s27 = scalar_lea.vmem (%p67_p3), [#allocation2], %s2820_s23 }
  0x11   : > { %v178_v0 = vld [vmem:[%s3435_s26] sm:$0xf] (%p67_p3)  ;;  %v180_v1 = vld [vmem:[%s3435_s26 + $0x8] sm:$0xf] (%p67_p3)  ;;  %v182_v2 = vld [vmem:[%s3435_s26 + $0x10] sm:$0xf] (%p67_p3) }
  0x12   : > { %179 = vst [vmem:[%s3439_s27] sm:$0xf] (%p67_p3), %v178_v0  ;;  %181 = vst [vmem:[%s3439_s27 + $0x4] sm:$0xf] (%p67_p3), %v180_v1  ;;  %v184_v3 = vld [vmem:[%s3435_s26 + $0x18] sm:$0xf] (%p67_p3) }
  0x13   : > { %v186_v4 = vld [vmem:[%s3435_s26 + $0x20] sm:$0xf] (%p67_p3)  ;;  %183 = vst [vmem:[%s3439_s27 + $0x8] sm:$0xf] (%p67_p3), %v182_v2  ;;  %185 = vst [vmem:[%s3439_s27 + $0xc] sm:$0xf] (%p67_p3), %v184_v3 }
  0x14   : > { %187 = vst [vmem:[%s3439_s27 + $0x10] sm:$0xf] (%p67_p3), %v186_v4  ;;  %v188_v5 = vld [vmem:[%s3435_s26 + $0x28] sm:$0xf] (%p67_p3)  ;;  %v190_v6 = vld [vmem:[%s3435_s26 + $0x30] sm:$0xf] (%p67_p3) }
  0x15   : > { %v192_v7 = vld [vmem:[%s3435_s26 + $0x38] sm:$0xf]  ;;  %189 = vst [vmem:[%s3439_s27 + $0x14] sm:$0xf] %v188_v5  ;;  %191 = vst [vmem:[%s3439_s27 + $0x18] sm:$0xf] %v190_v6 }
  0x16   : > { %193 = vst [vmem:[%s3439_s27 + $0x1c] sm:$0xf] %v192_v7  ;;  %v194_v8 = vld [vmem:[%s3435_s26 + $0x40] sm:$0xf]  ;;  %v196_v9 = vld [vmem:[%s3435_s26 + $0x48] sm:$0xf] }
  0x17   : > { %v198_v10 = vld [vmem:[%s3435_s26 + $0x50] sm:$0xf]  ;;  %195 = vst [vmem:[%s3439_s27 + $0x20] sm:$0xf] %v194_v8  ;;  %197 = vst [vmem:[%s3439_s27 + $0x24] sm:$0xf] %v196_v9 }
  0x18   : > { %199 = vst [vmem:[%s3439_s27 + $0x28] sm:$0xf] %v198_v10  ;;  %v200_v11 = vld [vmem:[%s3435_s26 + $0x58] sm:$0xf]  ;;  %v202_v12 = vld [vmem:[%s3435_s26 + $0x60] sm:$0xf] }
  0x19   : > { %v204_v13 = vld [vmem:[%s3435_s26 + $0x68] sm:$0xf]  ;;  %201 = vst [vmem:[%s3439_s27 + $0x2c] sm:$0xf] %v200_v11  ;;  %203 = vst [vmem:[%s3439_s27 + $0x30] sm:$0xf] %v202_v12 }
  0x1a   : > { %205 = vst [vmem:[%s3439_s27 + $0x34] sm:$0xf] %v204_v13  ;;  %v206_v14 = vld [vmem:[%s3435_s26 + $0x70] sm:$0xf]  ;;  %v208_v15 = vld [vmem:[%s3435_s26 + $0x78] sm:$0xf] }
  0x1b   : > { %v210_v16 = vld [vmem:[%s3435_s26 + $0x80] sm:$0xf]  ;;  %207 = vst [vmem:[%s3439_s27 + $0x38] sm:$0xf] %v206_v14  ;;  %209 = vst [vmem:[%s3439_s27 + $0x3c] sm:$0xf] %v208_v15 }
  0x1c   : > { %211 = vst [vmem:[%s3439_s27 + $0x40] sm:$0xf] %v210_v16  ;;  %v212_v17 = vld [vmem:[%s3435_s26 + $0x88] sm:$0xf]  ;;  %v214_v18 = vld [vmem:[%s3435_s26 + $0x90] sm:$0xf] }
  0x1d   : > { %v216_v19 = vld [vmem:[%s3435_s26 + $0x98] sm:$0xf]  ;;  %213 = vst [vmem:[%s3439_s27 + $0x44] sm:$0xf] %v212_v17  ;;  %215 = vst [vmem:[%s3439_s27 + $0x48] sm:$0xf] %v214_v18 }
  0x1e   : > { %217 = vst [vmem:[%s3439_s27 + $0x4c] sm:$0xf] %v216_v19  ;;  %v218_v20 = vld [vmem:[%s3435_s26 + $0xa0] sm:$0xf]  ;;  %v220_v21 = vld [vmem:[%s3435_s26 + $0xa8] sm:$0xf] }
  0x1f   : > { %v222_v22 = vld [vmem:[%s3435_s26 + $0xb0] sm:$0xf]  ;;  %219 = vst [vmem:[%s3439_s27 + $0x50] sm:$0xf] %v218_v20  ;;  %221 = vst [vmem:[%s3439_s27 + $0x54] sm:$0xf] %v220_v21 }
  0x20   : > { %223 = vst [vmem:[%s3439_s27 + $0x58] sm:$0xf] %v222_v22  ;;  %v224_v23 = vld [vmem:[%s3435_s26 + $0xb8] sm:$0xf]  ;;  %v226_v24 = vld [vmem:[%s3435_s26 + $0xc0] sm:$0xf] }
  0x21   : > { %v228_v25 = vld [vmem:[%s3435_s26 + $0xc8] sm:$0xf]  ;;  %225 = vst [vmem:[%s3439_s27 + $0x5c] sm:$0xf] %v224_v23  ;;  %227 = vst [vmem:[%s3439_s27 + $0x60] sm:$0xf] %v226_v24 }
  0x22   : > { %229 = vst [vmem:[%s3439_s27 + $0x64] sm:$0xf] %v228_v25  ;;  %v230_v26 = vld [vmem:[%s3435_s26 + $0xd0] sm:$0xf]  ;;  %v232_v27 = vld [vmem:[%s3435_s26 + $0xd8] sm:$0xf] }
  0x23   : > { %v234_v28 = vld [vmem:[%s3435_s26 + $0xe0] sm:$0xf]  ;;  %231 = vst [vmem:[%s3439_s27 + $0x68] sm:$0xf] %v230_v26  ;;  %233 = vst [vmem:[%s3439_s27 + $0x6c] sm:$0xf] %v232_v27 }
  0x24   : > { %235 = vst [vmem:[%s3439_s27 + $0x70] sm:$0xf] %v234_v28  ;;  %v236_v29 = vld [vmem:[%s3435_s26 + $0xe8] sm:$0xf]  ;;  %v238_v30 = vld [vmem:[%s3435_s26 + $0xf0] sm:$0xf] }
  0x25   : > { %v240_v31 = vld [vmem:[%s3435_s26 + $0xf8] sm:$0xf]  ;;  %237 = vst [vmem:[%s3439_s27 + $0x74] sm:$0xf] %v236_v29  ;;  %239 = vst [vmem:[%s3439_s27 + $0x78] sm:$0xf] %v238_v30 }
  0x26   : > { %241 = vst [vmem:[%s3439_s27 + $0x7c] sm:$0xf] %v240_v31  ;;  %v242_v32 = vld [vmem:[%s3435_s26 + $0x100] sm:$0xf]  ;;  %v244_v33 = vld [vmem:[%s3435_s26 + $0x108] sm:$0xf] }
  0x27   : > { %v246_v34 = vld [vmem:[%s3435_s26 + $0x110] sm:$0xf]  ;;  %243 = vst [vmem:[%s3439_s27 + $0x80] sm:$0xf] %v242_v32  ;;  %245 = vst [vmem:[%s3439_s27 + $0x84] sm:$0xf] %v244_v33 }
  0x28   : > { %247 = vst [vmem:[%s3439_s27 + $0x88] sm:$0xf] %v246_v34  ;;  %v248_v35 = vld [vmem:[%s3435_s26 + $0x118] sm:$0xf]  ;;  %v250_v36 = vld [vmem:[%s3435_s26 + $0x120] sm:$0xf] }
  0x29   : > { %v252_v37 = vld [vmem:[%s3435_s26 + $0x128] sm:$0xf]  ;;  %249 = vst [vmem:[%s3439_s27 + $0x8c] sm:$0xf] %v248_v35  ;;  %251 = vst [vmem:[%s3439_s27 + $0x90] sm:$0xf] %v250_v36 }
  0x2a   : > { %253 = vst [vmem:[%s3439_s27 + $0x94] sm:$0xf] %v252_v37  ;;  %v254_v38 = vld [vmem:[%s3435_s26 + $0x130] sm:$0xf]  ;;  %v256_v39 = vld [vmem:[%s3435_s26 + $0x138] sm:$0xf] }
  0x2b   : > { %v258_v40 = vld [vmem:[%s3435_s26 + $0x140] sm:$0xf]  ;;  %255 = vst [vmem:[%s3439_s27 + $0x98] sm:$0xf] %v254_v38  ;;  %257 = vst [vmem:[%s3439_s27 + $0x9c] sm:$0xf] %v256_v39 }
  0x2c   : > { %259 = vst [vmem:[%s3439_s27 + $0xa0] sm:$0xf] %v258_v40  ;;  %v260_v41 = vld [vmem:[%s3435_s26 + $0x148] sm:$0xf]  ;;  %v262_v42 = vld [vmem:[%s3435_s26 + $0x150] sm:$0xf] }
  0x2d   : > { %v264_v43 = vld [vmem:[%s3435_s26 + $0x158] sm:$0xf]  ;;  %261 = vst [vmem:[%s3439_s27 + $0xa4] sm:$0xf] %v260_v41  ;;  %263 = vst [vmem:[%s3439_s27 + $0xa8] sm:$0xf] %v262_v42 }
  0x2e   : > { %265 = vst [vmem:[%s3439_s27 + $0xac] sm:$0xf] %v264_v43  ;;  %v266_v44 = vld [vmem:[%s3435_s26 + $0x160] sm:$0xf]  ;;  %v268_v45 = vld [vmem:[%s3435_s26 + $0x168] sm:$0xf] }
  0x2f   : > { %v270_v46 = vld [vmem:[%s3435_s26 + $0x170] sm:$0xf]  ;;  %267 = vst [vmem:[%s3439_s27 + $0xb0] sm:$0xf] %v266_v44  ;;  %269 = vst [vmem:[%s3439_s27 + $0xb4] sm:$0xf] %v268_v45 }
  0x30   : > { %271 = vst [vmem:[%s3439_s27 + $0xb8] sm:$0xf] %v270_v46  ;;  %v272_v47 = vld [vmem:[%s3435_s26 + $0x178] sm:$0xf]  ;;  %v274_v48 = vld [vmem:[%s3435_s26 + $0x180] sm:$0xf] }
  0x31   : > { %v276_v49 = vld [vmem:[%s3435_s26 + $0x188] sm:$0xf]  ;;  %273 = vst [vmem:[%s3439_s27 + $0xbc] sm:$0xf] %v272_v47  ;;  %275 = vst [vmem:[%s3439_s27 + $0xc0] sm:$0xf] %v274_v48 }
  0x32   : > { %277 = vst [vmem:[%s3439_s27 + $0xc4] sm:$0xf] %v276_v49  ;;  %v278_v50 = vld [vmem:[%s3435_s26 + $0x190] sm:$0xf]  ;;  %v280_v51 = vld [vmem:[%s3435_s26 + $0x198] sm:$0xf] }
  0x33   : > { %v282_v52 = vld [vmem:[%s3435_s26 + $0x1a0] sm:$0xf]  ;;  %279 = vst [vmem:[%s3439_s27 + $0xc8] sm:$0xf] %v278_v50  ;;  %281 = vst [vmem:[%s3439_s27 + $0xcc] sm:$0xf] %v280_v51 }
  0x34   : > { %283 = vst [vmem:[%s3439_s27 + $0xd0] sm:$0xf] %v282_v52  ;;  %v284_v53 = vld [vmem:[%s3435_s26 + $0x1a8] sm:$0xf]  ;;  %v286_v54 = vld [vmem:[%s3435_s26 + $0x1b0] sm:$0xf] }
  0x35   : > { %v288_v55 = vld [vmem:[%s3435_s26 + $0x1b8] sm:$0xf]  ;;  %285 = vst [vmem:[%s3439_s27 + $0xd4] sm:$0xf] %v284_v53  ;;  %287 = vst [vmem:[%s3439_s27 + $0xd8] sm:$0xf] %v286_v54 }
  0x36   : > { %289 = vst [vmem:[%s3439_s27 + $0xdc] sm:$0xf] %v288_v55  ;;  %v290_v56 = vld [vmem:[%s3435_s26 + $0x1c0] sm:$0xf]  ;;  %v292_v57 = vld [vmem:[%s3435_s26 + $0x1c8] sm:$0xf] }
  0x37   : > { %v294_v58 = vld [vmem:[%s3435_s26 + $0x1d0] sm:$0xf]  ;;  %291 = vst [vmem:[%s3439_s27 + $0xe0] sm:$0xf] %v290_v56  ;;  %293 = vst [vmem:[%s3439_s27 + $0xe4] sm:$0xf] %v292_v57 }
  0x38   : > { %295 = vst [vmem:[%s3439_s27 + $0xe8] sm:$0xf] %v294_v58  ;;  %v296_v59 = vld [vmem:[%s3435_s26 + $0x1d8] sm:$0xf]  ;;  %v298_v60 = vld [vmem:[%s3435_s26 + $0x1e0] sm:$0xf] }
  0x39   : > { %v300_v61 = vld [vmem:[%s3435_s26 + $0x1e8] sm:$0xf]  ;;  %297 = vst [vmem:[%s3439_s27 + $0xec] sm:$0xf] %v296_v59  ;;  %299 = vst [vmem:[%s3439_s27 + $0xf0] sm:$0xf] %v298_v60 }
  0x3a   : > { %301 = vst [vmem:[%s3439_s27 + $0xf4] sm:$0xf] %v300_v61  ;;  %v302_v62 = vld [vmem:[%s3435_s26 + $0x1f0] sm:$0xf]  ;;  %v304_v63 = vld [vmem:[%s3435_s26 + $0x1f8] sm:$0xf] }
  0x3b   : > { %v306_v0 = vld [vmem:[%s3435_s26 + $0x200] sm:$0xf]  ;;  %303 = vst [vmem:[%s3439_s27 + $0xf8] sm:$0xf] %v302_v62  ;;  %305 = vst [vmem:[%s3439_s27 + $0xfc] sm:$0xf] %v304_v63 }
  0x3c   : > { %307 = vst [vmem:[%s3439_s27 + $0x100] sm:$0xf] %v306_v0  ;;  %v308_v1 = vld [vmem:[%s3435_s26 + $0x208] sm:$0xf]  ;;  %v310_v2 = vld [vmem:[%s3435_s26 + $0x210] sm:$0xf] }
  0x3d   : > { %v312_v3 = vld [vmem:[%s3435_s26 + $0x218] sm:$0xf]  ;;  %309 = vst [vmem:[%s3439_s27 + $0x104] sm:$0xf] %v308_v1  ;;  %311 = vst [vmem:[%s3439_s27 + $0x108] sm:$0xf] %v310_v2 }
  0x3e   : > { %313 = vst [vmem:[%s3439_s27 + $0x10c] sm:$0xf] %v312_v3  ;;  %v314_v4 = vld [vmem:[%s3435_s26 + $0x220] sm:$0xf]  ;;  %v316_v5 = vld [vmem:[%s3435_s26 + $0x228] sm:$0xf] }
  0x3f   : > { %v318_v6 = vld [vmem:[%s3435_s26 + $0x230] sm:$0xf]  ;;  %315 = vst [vmem:[%s3439_s27 + $0x110] sm:$0xf] %v314_v4  ;;  %317 = vst [vmem:[%s3439_s27 + $0x114] sm:$0xf] %v316_v5 }
  0x40   : > { %319 = vst [vmem:[%s3439_s27 + $0x118] sm:$0xf] %v318_v6  ;;  %v320_v7 = vld [vmem:[%s3435_s26 + $0x238] sm:$0xf]  ;;  %v322_v8 = vld [vmem:[%s3435_s26 + $0x240] sm:$0xf] }
  0x41   : > { %v324_v9 = vld [vmem:[%s3435_s26 + $0x248] sm:$0xf]  ;;  %321 = vst [vmem:[%s3439_s27 + $0x11c] sm:$0xf] %v320_v7  ;;  %323 = vst [vmem:[%s3439_s27 + $0x120] sm:$0xf] %v322_v8 }
  0x42   : > { %325 = vst [vmem:[%s3439_s27 + $0x124] sm:$0xf] %v324_v9  ;;  %v326_v10 = vld [vmem:[%s3435_s26 + $0x250] sm:$0xf]  ;;  %v328_v11 = vld [vmem:[%s3435_s26 + $0x258] sm:$0xf] }
  0x43   : > { %v330_v12 = vld [vmem:[%s3435_s26 + $0x260] sm:$0xf]  ;;  %327 = vst [vmem:[%s3439_s27 + $0x128] sm:$0xf] %v326_v10  ;;  %329 = vst [vmem:[%s3439_s27 + $0x12c] sm:$0xf] %v328_v11 }
  0x44   : > { %331 = vst [vmem:[%s3439_s27 + $0x130] sm:$0xf] %v330_v12  ;;  %v332_v13 = vld [vmem:[%s3435_s26 + $0x268] sm:$0xf]  ;;  %v334_v14 = vld [vmem:[%s3435_s26 + $0x270] sm:$0xf] }
  0x45   : > { %v336_v15 = vld [vmem:[%s3435_s26 + $0x278] sm:$0xf]  ;;  %333 = vst [vmem:[%s3439_s27 + $0x134] sm:$0xf] %v332_v13  ;;  %335 = vst [vmem:[%s3439_s27 + $0x138] sm:$0xf] %v334_v14 }
  0x46   : > { %337 = vst [vmem:[%s3439_s27 + $0x13c] sm:$0xf] %v336_v15  ;;  %v338_v16 = vld [vmem:[%s3435_s26 + $0x280] sm:$0xf]  ;;  %v340_v17 = vld [vmem:[%s3435_s26 + $0x288] sm:$0xf] }
  0x47   : > { %v342_v18 = vld [vmem:[%s3435_s26 + $0x290] sm:$0xf]  ;;  %339 = vst [vmem:[%s3439_s27 + $0x140] sm:$0xf] %v338_v16  ;;  %341 = vst [vmem:[%s3439_s27 + $0x144] sm:$0xf] %v340_v17 }
  0x48   : > { %343 = vst [vmem:[%s3439_s27 + $0x148] sm:$0xf] %v342_v18  ;;  %v344_v19 = vld [vmem:[%s3435_s26 + $0x298] sm:$0xf]  ;;  %v346_v20 = vld [vmem:[%s3435_s26 + $0x2a0] sm:$0xf] }
  0x49   : > { %v348_v21 = vld [vmem:[%s3435_s26 + $0x2a8] sm:$0xf]  ;;  %345 = vst [vmem:[%s3439_s27 + $0x14c] sm:$0xf] %v344_v19  ;;  %347 = vst [vmem:[%s3439_s27 + $0x150] sm:$0xf] %v346_v20 }
  0x4a   : > { %349 = vst [vmem:[%s3439_s27 + $0x154] sm:$0xf] %v348_v21  ;;  %v350_v22 = vld [vmem:[%s3435_s26 + $0x2b0] sm:$0xf]  ;;  %v352_v23 = vld [vmem:[%s3435_s26 + $0x2b8] sm:$0xf] }
  0x4b   : > { %v354_v24 = vld [vmem:[%s3435_s26 + $0x2c0] sm:$0xf]  ;;  %351 = vst [vmem:[%s3439_s27 + $0x158] sm:$0xf] %v350_v22  ;;  %353 = vst [vmem:[%s3439_s27 + $0x15c] sm:$0xf] %v352_v23 }
  0x4c   : > { %355 = vst [vmem:[%s3439_s27 + $0x160] sm:$0xf] %v354_v24  ;;  %v356_v25 = vld [vmem:[%s3435_s26 + $0x2c8] sm:$0xf]  ;;  %v358_v26 = vld [vmem:[%s3435_s26 + $0x2d0] sm:$0xf] }
  0x4d   : > { %v360_v27 = vld [vmem:[%s3435_s26 + $0x2d8] sm:$0xf]  ;;  %357 = vst [vmem:[%s3439_s27 + $0x164] sm:$0xf] %v356_v25  ;;  %359 = vst [vmem:[%s3439_s27 + $0x168] sm:$0xf] %v358_v26 }
  0x4e   : > { %361 = vst [vmem:[%s3439_s27 + $0x16c] sm:$0xf] %v360_v27  ;;  %v362_v28 = vld [vmem:[%s3435_s26 + $0x2e0] sm:$0xf]  ;;  %v364_v29 = vld [vmem:[%s3435_s26 + $0x2e8] sm:$0xf] }
  0x4f   : > { %v366_v30 = vld [vmem:[%s3435_s26 + $0x2f0] sm:$0xf]  ;;  %363 = vst [vmem:[%s3439_s27 + $0x170] sm:$0xf] %v362_v28  ;;  %365 = vst [vmem:[%s3439_s27 + $0x174] sm:$0xf] %v364_v29 }
  0x50   : > { %367 = vst [vmem:[%s3439_s27 + $0x178] sm:$0xf] %v366_v30  ;;  %v368_v31 = vld [vmem:[%s3435_s26 + $0x2f8] sm:$0xf]  ;;  %v370_v32 = vld [vmem:[%s3435_s26 + $0x300] sm:$0xf] }
  0x51   : > { %v372_v33 = vld [vmem:[%s3435_s26 + $0x308] sm:$0xf]  ;;  %369 = vst [vmem:[%s3439_s27 + $0x17c] sm:$0xf] %v368_v31  ;;  %371 = vst [vmem:[%s3439_s27 + $0x180] sm:$0xf] %v370_v32 }
  0x52   : > { %373 = vst [vmem:[%s3439_s27 + $0x184] sm:$0xf] %v372_v33  ;;  %v374_v34 = vld [vmem:[%s3435_s26 + $0x310] sm:$0xf]  ;;  %v376_v35 = vld [vmem:[%s3435_s26 + $0x318] sm:$0xf] }
  0x53   : > { %v378_v36 = vld [vmem:[%s3435_s26 + $0x320] sm:$0xf]  ;;  %375 = vst [vmem:[%s3439_s27 + $0x188] sm:$0xf] %v374_v34  ;;  %377 = vst [vmem:[%s3439_s27 + $0x18c] sm:$0xf] %v376_v35 }
  0x54   : > { %379 = vst [vmem:[%s3439_s27 + $0x190] sm:$0xf] %v378_v36  ;;  %v380_v37 = vld [vmem:[%s3435_s26 + $0x328] sm:$0xf]  ;;  %v382_v38 = vld [vmem:[%s3435_s26 + $0x330] sm:$0xf] }
  0x55   : > { %v384_v39 = vld [vmem:[%s3435_s26 + $0x338] sm:$0xf]  ;;  %381 = vst [vmem:[%s3439_s27 + $0x194] sm:$0xf] %v380_v37  ;;  %383 = vst [vmem:[%s3439_s27 + $0x198] sm:$0xf] %v382_v38 }
  0x56   : > { %385 = vst [vmem:[%s3439_s27 + $0x19c] sm:$0xf] %v384_v39  ;;  %v386_v40 = vld [vmem:[%s3435_s26 + $0x340] sm:$0xf]  ;;  %v388_v41 = vld [vmem:[%s3435_s26 + $0x348] sm:$0xf] }
  0x57   : > { %v390_v42 = vld [vmem:[%s3435_s26 + $0x350] sm:$0xf]  ;;  %387 = vst [vmem:[%s3439_s27 + $0x1a0] sm:$0xf] %v386_v40  ;;  %389 = vst [vmem:[%s3439_s27 + $0x1a4] sm:$0xf] %v388_v41 }
  0x58   : > { %391 = vst [vmem:[%s3439_s27 + $0x1a8] sm:$0xf] %v390_v42  ;;  %v392_v43 = vld [vmem:[%s3435_s26 + $0x358] sm:$0xf]  ;;  %v394_v44 = vld [vmem:[%s3435_s26 + $0x360] sm:$0xf] }
  0x59   : > { %v396_v45 = vld [vmem:[%s3435_s26 + $0x368] sm:$0xf]  ;;  %393 = vst [vmem:[%s3439_s27 + $0x1ac] sm:$0xf] %v392_v43  ;;  %395 = vst [vmem:[%s3439_s27 + $0x1b0] sm:$0xf] %v394_v44 }
  0x5a   : > { %397 = vst [vmem:[%s3439_s27 + $0x1b4] sm:$0xf] %v396_v45  ;;  %v398_v46 = vld [vmem:[%s3435_s26 + $0x370] sm:$0xf]  ;;  %v400_v47 = vld [vmem:[%s3435_s26 + $0x378] sm:$0xf] }
  0x5b   : > { %v402_v48 = vld [vmem:[%s3435_s26 + $0x380] sm:$0xf]  ;;  %399 = vst [vmem:[%s3439_s27 + $0x1b8] sm:$0xf] %v398_v46  ;;  %401 = vst [vmem:[%s3439_s27 + $0x1bc] sm:$0xf] %v400_v47 }
  0x5c   : > { %403 = vst [vmem:[%s3439_s27 + $0x1c0] sm:$0xf] %v402_v48  ;;  %v404_v49 = vld [vmem:[%s3435_s26 + $0x388] sm:$0xf]  ;;  %v406_v50 = vld [vmem:[%s3435_s26 + $0x390] sm:$0xf] }
  0x5d   : > { %v408_v51 = vld [vmem:[%s3435_s26 + $0x398] sm:$0xf]  ;;  %405 = vst [vmem:[%s3439_s27 + $0x1c4] sm:$0xf] %v404_v49  ;;  %407 = vst [vmem:[%s3439_s27 + $0x1c8] sm:$0xf] %v406_v50 }
  0x5e   : > { %409 = vst [vmem:[%s3439_s27 + $0x1cc] sm:$0xf] %v408_v51  ;;  %v410_v52 = vld [vmem:[%s3435_s26 + $0x3a0] sm:$0xf]  ;;  %v412_v53 = vld [vmem:[%s3435_s26 + $0x3a8] sm:$0xf] }
  0x5f   : > { %v414_v54 = vld [vmem:[%s3435_s26 + $0x3b0] sm:$0xf]  ;;  %411 = vst [vmem:[%s3439_s27 + $0x1d0] sm:$0xf] %v410_v52  ;;  %413 = vst [vmem:[%s3439_s27 + $0x1d4] sm:$0xf] %v412_v53 }
  0x60   : > { %415 = vst [vmem:[%s3439_s27 + $0x1d8] sm:$0xf] %v414_v54  ;;  %v416_v55 = vld [vmem:[%s3435_s26 + $0x3b8] sm:$0xf]  ;;  %v418_v56 = vld [vmem:[%s3435_s26 + $0x3c0] sm:$0xf] }
  0x61   : > { %v420_v57 = vld [vmem:[%s3435_s26 + $0x3c8] sm:$0xf]  ;;  %417 = vst [vmem:[%s3439_s27 + $0x1dc] sm:$0xf] %v416_v55  ;;  %419 = vst [vmem:[%s3439_s27 + $0x1e0] sm:$0xf] %v418_v56 }
  0x62   : > { %421 = vst [vmem:[%s3439_s27 + $0x1e4] sm:$0xf] %v420_v57  ;;  %v422_v58 = vld [vmem:[%s3435_s26 + $0x3d0] sm:$0xf]  ;;  %v424_v59 = vld [vmem:[%s3435_s26 + $0x3d8] sm:$0xf] }
  0x63   : > { %v426_v60 = vld [vmem:[%s3435_s26 + $0x3e0] sm:$0xf]  ;;  %423 = vst [vmem:[%s3439_s27 + $0x1e8] sm:$0xf] %v422_v58  ;;  %425 = vst [vmem:[%s3439_s27 + $0x1ec] sm:$0xf] %v424_v59 }
  0x64   : > { %427 = vst [vmem:[%s3439_s27 + $0x1f0] sm:$0xf] %v426_v60  ;;  %v428_v61 = vld [vmem:[%s3435_s26 + $0x3e8] sm:$0xf]  ;;  %v430_v62 = vld [vmem:[%s3435_s26 + $0x3f0] sm:$0xf] }
  0x65   : > { %v432_v63 = vld [vmem:[%s3435_s26 + $0x3f8] sm:$0xf]  ;;  %429 = vst [vmem:[%s3439_s27 + $0x1f4] sm:$0xf] %v428_v61  ;;  %431 = vst [vmem:[%s3439_s27 + $0x1f8] sm:$0xf] %v430_v62 }
  0x66   : > { %433 = vst [vmem:[%s3439_s27 + $0x1fc] sm:$0xf] %v432_v63  ;;  %v434_v0 = vld [vmem:[%s3435_s26 + $0x400] sm:$0xf]  ;;  %v436_v1 = vld [vmem:[%s3435_s26 + $0x408] sm:$0xf] }
  0x67   : > { %v438_v2 = vld [vmem:[%s3435_s26 + $0x410] sm:$0xf]  ;;  %435 = vst [vmem:[%s3439_s27 + $0x200] sm:$0xf] %v434_v0  ;;  %437 = vst [vmem:[%s3439_s27 + $0x204] sm:$0xf] %v436_v1 }
  0x68   : > { %439 = vst [vmem:[%s3439_s27 + $0x208] sm:$0xf] %v438_v2  ;;  %v440_v3 = vld [vmem:[%s3435_s26 + $0x418] sm:$0xf]  ;;  %v442_v4 = vld [vmem:[%s3435_s26 + $0x420] sm:$0xf] }
  0x69   : > { %v444_v5 = vld [vmem:[%s3435_s26 + $0x428] sm:$0xf]  ;;  %441 = vst [vmem:[%s3439_s27 + $0x20c] sm:$0xf] %v440_v3  ;;  %443 = vst [vmem:[%s3439_s27 + $0x210] sm:$0xf] %v442_v4 }
  0x6a   : > { %445 = vst [vmem:[%s3439_s27 + $0x214] sm:$0xf] %v444_v5  ;;  %v446_v6 = vld [vmem:[%s3435_s26 + $0x430] sm:$0xf]  ;;  %v448_v7 = vld [vmem:[%s3435_s26 + $0x438] sm:$0xf] }
  0x6b   : > { %v450_v8 = vld [vmem:[%s3435_s26 + $0x440] sm:$0xf]  ;;  %447 = vst [vmem:[%s3439_s27 + $0x218] sm:$0xf] %v446_v6  ;;  %449 = vst [vmem:[%s3439_s27 + $0x21c] sm:$0xf] %v448_v7 }
  0x6c   : > { %451 = vst [vmem:[%s3439_s27 + $0x220] sm:$0xf] %v450_v8  ;;  %v452_v9 = vld [vmem:[%s3435_s26 + $0x448] sm:$0xf]  ;;  %v454_v10 = vld [vmem:[%s3435_s26 + $0x450] sm:$0xf] }
  0x6d   : > { %v456_v11 = vld [vmem:[%s3435_s26 + $0x458] sm:$0xf]  ;;  %453 = vst [vmem:[%s3439_s27 + $0x224] sm:$0xf] %v452_v9  ;;  %455 = vst [vmem:[%s3439_s27 + $0x228] sm:$0xf] %v454_v10 }
  0x6e   : > { %457 = vst [vmem:[%s3439_s27 + $0x22c] sm:$0xf] %v456_v11  ;;  %v458_v12 = vld [vmem:[%s3435_s26 + $0x460] sm:$0xf]  ;;  %v460_v13 = vld [vmem:[%s3435_s26 + $0x468] sm:$0xf] }
  0x6f   : > { %v462_v14 = vld [vmem:[%s3435_s26 + $0x470] sm:$0xf]  ;;  %459 = vst [vmem:[%s3439_s27 + $0x230] sm:$0xf] %v458_v12  ;;  %461 = vst [vmem:[%s3439_s27 + $0x234] sm:$0xf] %v460_v13 }
  0x70   : > { %463 = vst [vmem:[%s3439_s27 + $0x238] sm:$0xf] %v462_v14  ;;  %v464_v15 = vld [vmem:[%s3435_s26 + $0x478] sm:$0xf]  ;;  %v466_v16 = vld [vmem:[%s3435_s26 + $0x480] sm:$0xf] }
  0x71   : > { %v468_v17 = vld [vmem:[%s3435_s26 + $0x488] sm:$0xf]  ;;  %465 = vst [vmem:[%s3439_s27 + $0x23c] sm:$0xf] %v464_v15  ;;  %467 = vst [vmem:[%s3439_s27 + $0x240] sm:$0xf] %v466_v16 }
  0x72   : > { %469 = vst [vmem:[%s3439_s27 + $0x244] sm:$0xf] %v468_v17  ;;  %v470_v18 = vld [vmem:[%s3435_s26 + $0x490] sm:$0xf]  ;;  %v472_v19 = vld [vmem:[%s3435_s26 + $0x498] sm:$0xf] }
  0x73   : > { %v474_v20 = vld [vmem:[%s3435_s26 + $0x4a0] sm:$0xf]  ;;  %471 = vst [vmem:[%s3439_s27 + $0x248] sm:$0xf] %v470_v18  ;;  %473 = vst [vmem:[%s3439_s27 + $0x24c] sm:$0xf] %v472_v19 }
  0x74   : > { %475 = vst [vmem:[%s3439_s27 + $0x250] sm:$0xf] %v474_v20  ;;  %v476_v21 = vld [vmem:[%s3435_s26 + $0x4a8] sm:$0xf]  ;;  %v478_v22 = vld [vmem:[%s3435_s26 + $0x4b0] sm:$0xf] }
  0x75   : > { %v480_v23 = vld [vmem:[%s3435_s26 + $0x4b8] sm:$0xf]  ;;  %477 = vst [vmem:[%s3439_s27 + $0x254] sm:$0xf] %v476_v21  ;;  %479 = vst [vmem:[%s3439_s27 + $0x258] sm:$0xf] %v478_v22 }
  0x76   : > { %481 = vst [vmem:[%s3439_s27 + $0x25c] sm:$0xf] %v480_v23  ;;  %v482_v24 = vld [vmem:[%s3435_s26 + $0x4c0] sm:$0xf]  ;;  %v484_v25 = vld [vmem:[%s3435_s26 + $0x4c8] sm:$0xf] }
  0x77   : > { %v486_v26 = vld [vmem:[%s3435_s26 + $0x4d0] sm:$0xf]  ;;  %483 = vst [vmem:[%s3439_s27 + $0x260] sm:$0xf] %v482_v24  ;;  %485 = vst [vmem:[%s3439_s27 + $0x264] sm:$0xf] %v484_v25 }
  0x78   : > { %487 = vst [vmem:[%s3439_s27 + $0x268] sm:$0xf] %v486_v26  ;;  %v488_v27 = vld [vmem:[%s3435_s26 + $0x4d8] sm:$0xf]  ;;  %v490_v28 = vld [vmem:[%s3435_s26 + $0x4e0] sm:$0xf] }
  0x79   : > { %v492_v29 = vld [vmem:[%s3435_s26 + $0x4e8] sm:$0xf]  ;;  %489 = vst [vmem:[%s3439_s27 + $0x26c] sm:$0xf] %v488_v27  ;;  %491 = vst [vmem:[%s3439_s27 + $0x270] sm:$0xf] %v490_v28 }
  0x7a   : > { %493 = vst [vmem:[%s3439_s27 + $0x274] sm:$0xf] %v492_v29  ;;  %v494_v30 = vld [vmem:[%s3435_s26 + $0x4f0] sm:$0xf]  ;;  %v496_v31 = vld [vmem:[%s3435_s26 + $0x4f8] sm:$0xf] }
  0x7b   : > { %v498_v32 = vld [vmem:[%s3435_s26 + $0x500] sm:$0xf]  ;;  %495 = vst [vmem:[%s3439_s27 + $0x278] sm:$0xf] %v494_v30  ;;  %497 = vst [vmem:[%s3439_s27 + $0x27c] sm:$0xf] %v496_v31 }
  0x7c   : > { %499 = vst [vmem:[%s3439_s27 + $0x280] sm:$0xf] %v498_v32  ;;  %v500_v33 = vld [vmem:[%s3435_s26 + $0x508] sm:$0xf]  ;;  %v502_v34 = vld [vmem:[%s3435_s26 + $0x510] sm:$0xf] }
  0x7d   : > { %v504_v35 = vld [vmem:[%s3435_s26 + $0x518] sm:$0xf]  ;;  %501 = vst [vmem:[%s3439_s27 + $0x284] sm:$0xf] %v500_v33  ;;  %503 = vst [vmem:[%s3439_s27 + $0x288] sm:$0xf] %v502_v34 }
  0x7e   : > { %505 = vst [vmem:[%s3439_s27 + $0x28c] sm:$0xf] %v504_v35  ;;  %v506_v36 = vld [vmem:[%s3435_s26 + $0x520] sm:$0xf]  ;;  %v508_v37 = vld [vmem:[%s3435_s26 + $0x528] sm:$0xf] }
  0x7f   : > { %v510_v38 = vld [vmem:[%s3435_s26 + $0x530] sm:$0xf]  ;;  %507 = vst [vmem:[%s3439_s27 + $0x290] sm:$0xf] %v506_v36  ;;  %509 = vst [vmem:[%s3439_s27 + $0x294] sm:$0xf] %v508_v37 }
  0x80   : > { %511 = vst [vmem:[%s3439_s27 + $0x298] sm:$0xf] %v510_v38  ;;  %v512_v39 = vld [vmem:[%s3435_s26 + $0x538] sm:$0xf]  ;;  %v514_v40 = vld [vmem:[%s3435_s26 + $0x540] sm:$0xf] }
  0x81   : > { %v516_v41 = vld [vmem:[%s3435_s26 + $0x548] sm:$0xf]  ;;  %513 = vst [vmem:[%s3439_s27 + $0x29c] sm:$0xf] %v512_v39  ;;  %515 = vst [vmem:[%s3439_s27 + $0x2a0] sm:$0xf] %v514_v40 }
  0x82   : > { %517 = vst [vmem:[%s3439_s27 + $0x2a4] sm:$0xf] %v516_v41  ;;  %v518_v42 = vld [vmem:[%s3435_s26 + $0x550] sm:$0xf]  ;;  %v520_v43 = vld [vmem:[%s3435_s26 + $0x558] sm:$0xf] }
  0x83   : > { %v522_v44 = vld [vmem:[%s3435_s26 + $0x560] sm:$0xf]  ;;  %519 = vst [vmem:[%s3439_s27 + $0x2a8] sm:$0xf] %v518_v42  ;;  %521 = vst [vmem:[%s3439_s27 + $0x2ac] sm:$0xf] %v520_v43 }
  0x84   : > { %523 = vst [vmem:[%s3439_s27 + $0x2b0] sm:$0xf] %v522_v44  ;;  %v524_v45 = vld [vmem:[%s3435_s26 + $0x568] sm:$0xf]  ;;  %v526_v46 = vld [vmem:[%s3435_s26 + $0x570] sm:$0xf] }
  0x85   : > { %v528_v47 = vld [vmem:[%s3435_s26 + $0x578] sm:$0xf]  ;;  %525 = vst [vmem:[%s3439_s27 + $0x2b4] sm:$0xf] %v524_v45  ;;  %527 = vst [vmem:[%s3439_s27 + $0x2b8] sm:$0xf] %v526_v46 }
  0x86   : > { %529 = vst [vmem:[%s3439_s27 + $0x2bc] sm:$0xf] %v528_v47  ;;  %v530_v48 = vld [vmem:[%s3435_s26 + $0x580] sm:$0xf]  ;;  %v532_v49 = vld [vmem:[%s3435_s26 + $0x588] sm:$0xf] }
  0x87   : > { %v534_v50 = vld [vmem:[%s3435_s26 + $0x590] sm:$0xf]  ;;  %531 = vst [vmem:[%s3439_s27 + $0x2c0] sm:$0xf] %v530_v48  ;;  %533 = vst [vmem:[%s3439_s27 + $0x2c4] sm:$0xf] %v532_v49 }
  0x88   : > { %535 = vst [vmem:[%s3439_s27 + $0x2c8] sm:$0xf] %v534_v50  ;;  %v536_v51 = vld [vmem:[%s3435_s26 + $0x598] sm:$0xf]  ;;  %v538_v52 = vld [vmem:[%s3435_s26 + $0x5a0] sm:$0xf] }
  0x89   : > { %v540_v53 = vld [vmem:[%s3435_s26 + $0x5a8] sm:$0xf]  ;;  %537 = vst [vmem:[%s3439_s27 + $0x2cc] sm:$0xf] %v536_v51  ;;  %539 = vst [vmem:[%s3439_s27 + $0x2d0] sm:$0xf] %v538_v52 }
  0x8a   : > { %541 = vst [vmem:[%s3439_s27 + $0x2d4] sm:$0xf] %v540_v53  ;;  %v542_v54 = vld [vmem:[%s3435_s26 + $0x5b0] sm:$0xf]  ;;  %v544_v55 = vld [vmem:[%s3435_s26 + $0x5b8] sm:$0xf] }
  0x8b   : > { %v546_v56 = vld [vmem:[%s3435_s26 + $0x5c0] sm:$0xf]  ;;  %543 = vst [vmem:[%s3439_s27 + $0x2d8] sm:$0xf] %v542_v54  ;;  %545 = vst [vmem:[%s3439_s27 + $0x2dc] sm:$0xf] %v544_v55 }
  0x8c   : > { %547 = vst [vmem:[%s3439_s27 + $0x2e0] sm:$0xf] %v546_v56  ;;  %v548_v57 = vld [vmem:[%s3435_s26 + $0x5c8] sm:$0xf]  ;;  %v550_v58 = vld [vmem:[%s3435_s26 + $0x5d0] sm:$0xf] }
  0x8d   : > { %v552_v59 = vld [vmem:[%s3435_s26 + $0x5d8] sm:$0xf]  ;;  %549 = vst [vmem:[%s3439_s27 + $0x2e4] sm:$0xf] %v548_v57  ;;  %551 = vst [vmem:[%s3439_s27 + $0x2e8] sm:$0xf] %v550_v58 }
  0x8e   : > { %553 = vst [vmem:[%s3439_s27 + $0x2ec] sm:$0xf] %v552_v59  ;;  %v554_v60 = vld [vmem:[%s3435_s26 + $0x5e0] sm:$0xf]  ;;  %v556_v61 = vld [vmem:[%s3435_s26 + $0x5e8] sm:$0xf] }
  0x8f   : > { %v558_v62 = vld [vmem:[%s3435_s26 + $0x5f0] sm:$0xf]  ;;  %555 = vst [vmem:[%s3439_s27 + $0x2f0] sm:$0xf] %v554_v60  ;;  %557 = vst [vmem:[%s3439_s27 + $0x2f4] sm:$0xf] %v556_v61 }
  0x90   : > { %559 = vst [vmem:[%s3439_s27 + $0x2f8] sm:$0xf] %v558_v62  ;;  %v560_v63 = vld [vmem:[%s3435_s26 + $0x5f8] sm:$0xf]  ;;  %v562_v0 = vld [vmem:[%s3435_s26 + $0x600] sm:$0xf] }
  0x91   : > { %v564_v1 = vld [vmem:[%s3435_s26 + $0x608] sm:$0xf]  ;;  %561 = vst [vmem:[%s3439_s27 + $0x2fc] sm:$0xf] %v560_v63  ;;  %563 = vst [vmem:[%s3439_s27 + $0x300] sm:$0xf] %v562_v0 }
  0x92   : > { %565 = vst [vmem:[%s3439_s27 + $0x304] sm:$0xf] %v564_v1  ;;  %v566_v2 = vld [vmem:[%s3435_s26 + $0x610] sm:$0xf]  ;;  %v568_v3 = vld [vmem:[%s3435_s26 + $0x618] sm:$0xf] }
  0x93   : > { %v570_v4 = vld [vmem:[%s3435_s26 + $0x620] sm:$0xf]  ;;  %567 = vst [vmem:[%s3439_s27 + $0x308] sm:$0xf] %v566_v2  ;;  %569 = vst [vmem:[%s3439_s27 + $0x30c] sm:$0xf] %v568_v3 }
  0x94   : > { %571 = vst [vmem:[%s3439_s27 + $0x310] sm:$0xf] %v570_v4  ;;  %v572_v5 = vld [vmem:[%s3435_s26 + $0x628] sm:$0xf]  ;;  %v574_v6 = vld [vmem:[%s3435_s26 + $0x630] sm:$0xf] }
  0x95   : > { %v576_v7 = vld [vmem:[%s3435_s26 + $0x638] sm:$0xf]  ;;  %573 = vst [vmem:[%s3439_s27 + $0x314] sm:$0xf] %v572_v5  ;;  %575 = vst [vmem:[%s3439_s27 + $0x318] sm:$0xf] %v574_v6 }
  0x96   : > { %577 = vst [vmem:[%s3439_s27 + $0x31c] sm:$0xf] %v576_v7  ;;  %v578_v8 = vld [vmem:[%s3435_s26 + $0x640] sm:$0xf]  ;;  %v580_v9 = vld [vmem:[%s3435_s26 + $0x648] sm:$0xf] }
  0x97   : > { %v582_v10 = vld [vmem:[%s3435_s26 + $0x650] sm:$0xf]  ;;  %579 = vst [vmem:[%s3439_s27 + $0x320] sm:$0xf] %v578_v8  ;;  %581 = vst [vmem:[%s3439_s27 + $0x324] sm:$0xf] %v580_v9 }
  0x98   : > { %583 = vst [vmem:[%s3439_s27 + $0x328] sm:$0xf] %v582_v10  ;;  %v584_v11 = vld [vmem:[%s3435_s26 + $0x658] sm:$0xf]  ;;  %v586_v12 = vld [vmem:[%s3435_s26 + $0x660] sm:$0xf] }
  0x99   : > { %v588_v13 = vld [vmem:[%s3435_s26 + $0x668] sm:$0xf]  ;;  %585 = vst [vmem:[%s3439_s27 + $0x32c] sm:$0xf] %v584_v11  ;;  %587 = vst [vmem:[%s3439_s27 + $0x330] sm:$0xf] %v586_v12 }
  0x9a   : > { %589 = vst [vmem:[%s3439_s27 + $0x334] sm:$0xf] %v588_v13  ;;  %v590_v14 = vld [vmem:[%s3435_s26 + $0x670] sm:$0xf]  ;;  %v592_v15 = vld [vmem:[%s3435_s26 + $0x678] sm:$0xf] }
  0x9b   : > { %v594_v16 = vld [vmem:[%s3435_s26 + $0x680] sm:$0xf]  ;;  %591 = vst [vmem:[%s3439_s27 + $0x338] sm:$0xf] %v590_v14  ;;  %593 = vst [vmem:[%s3439_s27 + $0x33c] sm:$0xf] %v592_v15 }
  0x9c   : > { %595 = vst [vmem:[%s3439_s27 + $0x340] sm:$0xf] %v594_v16  ;;  %v596_v17 = vld [vmem:[%s3435_s26 + $0x688] sm:$0xf]  ;;  %v598_v18 = vld [vmem:[%s3435_s26 + $0x690] sm:$0xf] }
  0x9d   : > { %v600_v19 = vld [vmem:[%s3435_s26 + $0x698] sm:$0xf]  ;;  %597 = vst [vmem:[%s3439_s27 + $0x344] sm:$0xf] %v596_v17  ;;  %599 = vst [vmem:[%s3439_s27 + $0x348] sm:$0xf] %v598_v18 }
  0x9e   : > { %601 = vst [vmem:[%s3439_s27 + $0x34c] sm:$0xf] %v600_v19  ;;  %v602_v20 = vld [vmem:[%s3435_s26 + $0x6a0] sm:$0xf]  ;;  %v604_v21 = vld [vmem:[%s3435_s26 + $0x6a8] sm:$0xf] }
  0x9f   : > { %v606_v22 = vld [vmem:[%s3435_s26 + $0x6b0] sm:$0xf]  ;;  %603 = vst [vmem:[%s3439_s27 + $0x350] sm:$0xf] %v602_v20  ;;  %605 = vst [vmem:[%s3439_s27 + $0x354] sm:$0xf] %v604_v21 }
  0xa0   : > { %607 = vst [vmem:[%s3439_s27 + $0x358] sm:$0xf] %v606_v22  ;;  %v608_v23 = vld [vmem:[%s3435_s26 + $0x6b8] sm:$0xf]  ;;  %v610_v24 = vld [vmem:[%s3435_s26 + $0x6c0] sm:$0xf] }
  0xa1   : > { %v612_v25 = vld [vmem:[%s3435_s26 + $0x6c8] sm:$0xf]  ;;  %609 = vst [vmem:[%s3439_s27 + $0x35c] sm:$0xf] %v608_v23  ;;  %611 = vst [vmem:[%s3439_s27 + $0x360] sm:$0xf] %v610_v24 }
  0xa2   : > { %613 = vst [vmem:[%s3439_s27 + $0x364] sm:$0xf] %v612_v25  ;;  %v614_v26 = vld [vmem:[%s3435_s26 + $0x6d0] sm:$0xf]  ;;  %v616_v27 = vld [vmem:[%s3435_s26 + $0x6d8] sm:$0xf] }
  0xa3   : > { %v618_v28 = vld [vmem:[%s3435_s26 + $0x6e0] sm:$0xf]  ;;  %615 = vst [vmem:[%s3439_s27 + $0x368] sm:$0xf] %v614_v26  ;;  %617 = vst [vmem:[%s3439_s27 + $0x36c] sm:$0xf] %v616_v27 }
  0xa4   : > { %619 = vst [vmem:[%s3439_s27 + $0x370] sm:$0xf] %v618_v28  ;;  %v620_v29 = vld [vmem:[%s3435_s26 + $0x6e8] sm:$0xf]  ;;  %v622_v30 = vld [vmem:[%s3435_s26 + $0x6f0] sm:$0xf] }
  0xa5   : > { %v624_v31 = vld [vmem:[%s3435_s26 + $0x6f8] sm:$0xf]  ;;  %621 = vst [vmem:[%s3439_s27 + $0x374] sm:$0xf] %v620_v29  ;;  %623 = vst [vmem:[%s3439_s27 + $0x378] sm:$0xf] %v622_v30 }
  0xa6   : > { %625 = vst [vmem:[%s3439_s27 + $0x37c] sm:$0xf] %v624_v31  ;;  %v626_v32 = vld [vmem:[%s3435_s26 + $0x700] sm:$0xf]  ;;  %v628_v33 = vld [vmem:[%s3435_s26 + $0x708] sm:$0xf] }
  0xa7   : > { %v630_v34 = vld [vmem:[%s3435_s26 + $0x710] sm:$0xf]  ;;  %627 = vst [vmem:[%s3439_s27 + $0x380] sm:$0xf] %v626_v32  ;;  %629 = vst [vmem:[%s3439_s27 + $0x384] sm:$0xf] %v628_v33 }
  0xa8   : > { %631 = vst [vmem:[%s3439_s27 + $0x388] sm:$0xf] %v630_v34  ;;  %v632_v35 = vld [vmem:[%s3435_s26 + $0x718] sm:$0xf]  ;;  %v634_v36 = vld [vmem:[%s3435_s26 + $0x720] sm:$0xf] }
  0xa9   : > { %v636_v37 = vld [vmem:[%s3435_s26 + $0x728] sm:$0xf]  ;;  %633 = vst [vmem:[%s3439_s27 + $0x38c] sm:$0xf] %v632_v35  ;;  %635 = vst [vmem:[%s3439_s27 + $0x390] sm:$0xf] %v634_v36 }
  0xaa   : > { %637 = vst [vmem:[%s3439_s27 + $0x394] sm:$0xf] %v636_v37  ;;  %v638_v38 = vld [vmem:[%s3435_s26 + $0x730] sm:$0xf]  ;;  %v640_v39 = vld [vmem:[%s3435_s26 + $0x738] sm:$0xf] }
  0xab   : > { %v642_v40 = vld [vmem:[%s3435_s26 + $0x740] sm:$0xf]  ;;  %639 = vst [vmem:[%s3439_s27 + $0x398] sm:$0xf] %v638_v38  ;;  %641 = vst [vmem:[%s3439_s27 + $0x39c] sm:$0xf] %v640_v39 }
  0xac   : > { %643 = vst [vmem:[%s3439_s27 + $0x3a0] sm:$0xf] %v642_v40  ;;  %v644_v41 = vld [vmem:[%s3435_s26 + $0x748] sm:$0xf]  ;;  %v646_v42 = vld [vmem:[%s3435_s26 + $0x750] sm:$0xf] }
  0xad   : > { %v648_v43 = vld [vmem:[%s3435_s26 + $0x758] sm:$0xf]  ;;  %645 = vst [vmem:[%s3439_s27 + $0x3a4] sm:$0xf] %v644_v41  ;;  %647 = vst [vmem:[%s3439_s27 + $0x3a8] sm:$0xf] %v646_v42 }
  0xae   : > { %649 = vst [vmem:[%s3439_s27 + $0x3ac] sm:$0xf] %v648_v43  ;;  %v650_v44 = vld [vmem:[%s3435_s26 + $0x760] sm:$0xf]  ;;  %v652_v45 = vld [vmem:[%s3435_s26 + $0x768] sm:$0xf] }
  0xaf   : > { %v654_v46 = vld [vmem:[%s3435_s26 + $0x770] sm:$0xf]  ;;  %651 = vst [vmem:[%s3439_s27 + $0x3b0] sm:$0xf] %v650_v44  ;;  %653 = vst [vmem:[%s3439_s27 + $0x3b4] sm:$0xf] %v652_v45 }
  0xb0   : > { %655 = vst [vmem:[%s3439_s27 + $0x3b8] sm:$0xf] %v654_v46  ;;  %v656_v47 = vld [vmem:[%s3435_s26 + $0x778] sm:$0xf]  ;;  %v658_v48 = vld [vmem:[%s3435_s26 + $0x780] sm:$0xf] }
  0xb1   : > { %v660_v49 = vld [vmem:[%s3435_s26 + $0x788] sm:$0xf]  ;;  %657 = vst [vmem:[%s3439_s27 + $0x3bc] sm:$0xf] %v656_v47  ;;  %659 = vst [vmem:[%s3439_s27 + $0x3c0] sm:$0xf] %v658_v48 }
  0xb2   : > { %661 = vst [vmem:[%s3439_s27 + $0x3c4] sm:$0xf] %v660_v49  ;;  %v662_v50 = vld [vmem:[%s3435_s26 + $0x790] sm:$0xf]  ;;  %v664_v51 = vld [vmem:[%s3435_s26 + $0x798] sm:$0xf] }
  0xb3   : > { %v666_v52 = vld [vmem:[%s3435_s26 + $0x7a0] sm:$0xf]  ;;  %663 = vst [vmem:[%s3439_s27 + $0x3c8] sm:$0xf] %v662_v50  ;;  %665 = vst [vmem:[%s3439_s27 + $0x3cc] sm:$0xf] %v664_v51 }
  0xb4   : > { %667 = vst [vmem:[%s3439_s27 + $0x3d0] sm:$0xf] %v666_v52  ;;  %v668_v53 = vld [vmem:[%s3435_s26 + $0x7a8] sm:$0xf]  ;;  %v670_v54 = vld [vmem:[%s3435_s26 + $0x7b0] sm:$0xf] }
  0xb5   : > { %v672_v55 = vld [vmem:[%s3435_s26 + $0x7b8] sm:$0xf]  ;;  %669 = vst [vmem:[%s3439_s27 + $0x3d4] sm:$0xf] %v668_v53  ;;  %671 = vst [vmem:[%s3439_s27 + $0x3d8] sm:$0xf] %v670_v54 }
  0xb6   : > { %673 = vst [vmem:[%s3439_s27 + $0x3dc] sm:$0xf] %v672_v55  ;;  %v674_v56 = vld [vmem:[%s3435_s26 + $0x7c0] sm:$0xf]  ;;  %v676_v57 = vld [vmem:[%s3435_s26 + $0x7c8] sm:$0xf] }
  0xb7   : > { %v678_v58 = vld [vmem:[%s3435_s26 + $0x7d0] sm:$0xf]  ;;  %675 = vst [vmem:[%s3439_s27 + $0x3e0] sm:$0xf] %v674_v56  ;;  %677 = vst [vmem:[%s3439_s27 + $0x3e4] sm:$0xf] %v676_v57 }
  0xb8   : > { %679 = vst [vmem:[%s3439_s27 + $0x3e8] sm:$0xf] %v678_v58  ;;  %v680_v59 = vld [vmem:[%s3435_s26 + $0x7d8] sm:$0xf]  ;;  %v682_v60 = vld [vmem:[%s3435_s26 + $0x7e0] sm:$0xf] }
  0xb9   : > { %v684_v61 = vld [vmem:[%s3435_s26 + $0x7e8] sm:$0xf]  ;;  %681 = vst [vmem:[%s3439_s27 + $0x3ec] sm:$0xf] %v680_v59  ;;  %683 = vst [vmem:[%s3439_s27 + $0x3f0] sm:$0xf] %v682_v60 }
  0xba   : > { %685 = vst [vmem:[%s3439_s27 + $0x3f4] sm:$0xf] %v684_v61  ;;  %v686_v62 = vld [vmem:[%s3435_s26 + $0x7f0] sm:$0xf]  ;;  %v688_v63 = vld [vmem:[%s3435_s26 + $0x7f8] sm:$0xf] }
  0xbb   : > { %687 = vst [vmem:[%s3439_s27 + $0x3f8] sm:$0xf] %v686_v62  ;;  %689 = vst [vmem:[%s3439_s27 + $0x3fc] sm:$0xf] %v688_v63 }
  0xbc PF: > { %p2822_p6 = scmp.ge.s32.totalorder %s3370_s16, 1  ;;  %p1229_p7 = scmp.lt.s32.totalorder %s3370_s16, 3 }
  0xbe   : > { %p1230_p8 = pnand %p2822_p6, %p1229_p7 }
  0xbf   : > { %s1236_s28 = sand.u32 (!%p1230_p8), 1, %s3354_s12   ;;  %v3957_v0 = vld [vmem:[%s4171_s0] sm:$0xff] (!%p1230_p8)  ;;  %v3962_v1 = vld [vmem:[%s4171_s0 + $0x8] sm:$0xff] (!%p1230_p8)  ;;  %v4002_v33 = vld [vmem:[%s4171_s0 + $0x10] sm:$0xff] (!%p1230_p8)  ;;  %p1275_p9 = scmp.lt.s32.totalorder (!%p1230_p8), %s3362_s14, 1 }
  0xc0   : > { %1233 = sbr.rel (%p1230_p8) target bundleno = 549 (0x225), region = 69  ;;  %s2823_s6 = sshll.u32 (!%p1230_p8), %s1236_s28, 10  ;;  %v2827_v2 = vcombine.high (!%p1230_p8), %v3957_v0, %v3957_v0  ;;  %v2829_v3 = vcombine.high (!%p1230_p8), %v3962_v1, %v3962_v1  ;;  %v4008_v35 = vld [vmem:[%s4171_s0 + $0x18] sm:$0xff] (!%p1230_p8)  ;;  %v2826_v38 = vcombine.low (!%p1230_p8), %v3957_v0, %v3957_v0  ;;  %v2828_v39 = vcombine.low (!%p1230_p8), %v3962_v1, %v3962_v1 }
  0xc1   : > { %s3968_s7 = scalar_lea.vmem (!%p1230_p8), [#allocation2], %s2823_s6  ;;  %v2831_v42 = vcombine.high (!%p1230_p8), %v4002_v33, %v4002_v33  ;;  %v2833_v44 = vcombine.high (!%p1230_p8), %v4008_v35, %v4008_v35 }
  0xc2   : > { %v3188_v4 = vld [vmem:[%s3968_s7 + $0x40] sm:$0xff] (!%p1230_p8)   ;;  %2414 = vmatprep.mubr.bf16.mxu0 (!%p1230_p8), %v2827_v2  ;;  %2454 = vmatprep.mubr.bf16.mxu1 (!%p1230_p8), %v2829_v3  ;;  %v3192_v8 = vld [vmem:[%s3968_s7 + $0x48] sm:$0xff] (!%p1230_p8)   ;;  %v3196_v12 = vld [vmem:[%s3968_s7 + $0x50] sm:$0xff] (!%p1230_p8)  }
  0xc3   : > { %v3189_v5 = vld [vmem:[%s3968_s7 + $0xc0] sm:$0xff] (!%p1230_p8)   ;;  %2972 = vmatprep.subr.bf16.mxu0 (!%p1230_p8), %v3188_v4  ;;  %v3193_v9 = vld [vmem:[%s3968_s7 + $0xc8] sm:$0xff] (!%p1230_p8)   ;;  %v3197_v13 = vld [vmem:[%s3968_s7 + $0xd0] sm:$0xff] (!%p1230_p8)  }
  0xc4   : > { %v3190_v6 = vld [vmem:[%s3968_s7] sm:$0xff] (!%p1230_p8)   ;;  %2994 = vmatprep.subr.bf16.mxu1 (!%p1230_p8), %v3189_v5  ;;  %v3194_v10 = vld [vmem:[%s3968_s7 + $0x8] sm:$0xff] (!%p1230_p8)   ;;  %v3198_v14 = vld [vmem:[%s3968_s7 + $0x10] sm:$0xff] (!%p1230_p8)  }
  0xc5   : > { %v3191_v7 = vld [vmem:[%s3968_s7 + $0x80] sm:$0xff] (!%p1230_p8)   ;;  %2973 = vmatpush3.bf16.msra.mxu0 (!%p1230_p8), %v3190_v6  ;;  %v3195_v11 = vld [vmem:[%s3968_s7 + $0x88] sm:$0xff] (!%p1230_p8)   ;;  %v3199_v15 = vld [vmem:[%s3968_s7 + $0x90] sm:$0xff] (!%p1230_p8)  }
  0xc6   : > { %2995 = vmatpush3.bf16.msra.mxu1 (!%p1230_p8), %v3191_v7  ;;  %2974 = vmatprep.subr.bf16.mxu0 (!%p1230_p8), %v3192_v8  ;;  %v3200_v16 = vld [vmem:[%s3968_s7 + $0x58] sm:$0xff] (!%p1230_p8)   ;;  %v3204_v20 = vld [vmem:[%s3968_s7 + $0x60] sm:$0xff] (!%p1230_p8)   ;;  %v3208_v24 = vld [vmem:[%s3968_s7 + $0x68] sm:$0xff] (!%p1230_p8)  }
  0xc7   : > { %2996 = vmatprep.subr.bf16.mxu1 %v3193_v9  ;;  %v3201_v17 = vld [vmem:[%s3968_s7 + $0xd8] sm:$0xff]   ;;  %v3205_v21 = vld [vmem:[%s3968_s7 + $0xe0] sm:$0xff]   ;;  %v3209_v25 = vld [vmem:[%s3968_s7 + $0xe8] sm:$0xff]   ;;  %s4182_s14 = smov (!%p1275_p9, %s3362_s14), 1 }
  0xc8   : > { %v3202_v18 = vld [vmem:[%s3968_s7 + $0x18] sm:$0xff]   ;;  %v3206_v22 = vld [vmem:[%s3968_s7 + $0x20] sm:$0xff]   ;;  %v3210_v26 = vld [vmem:[%s3968_s7 + $0x28] sm:$0xff]   ;;  %s1277_s28 = scalar_lea.vmem %s4173_s2, %s4182_s14  ;;  %s2824_s29 = sshll.u32 %s4182_s14, 2 }
  0xc9   : > { %2975 = vmatpush3.bf16.msra.mxu0 %v3194_v10  ;;  %v3203_v19 = vld [vmem:[%s3968_s7 + $0x98] sm:$0xff]   ;;  %v3207_v23 = vld [vmem:[%s3968_s7 + $0xa0] sm:$0xff]   ;;  %v3211_v27 = vld [vmem:[%s3968_s7 + $0xa8] sm:$0xff]   ;;  %s1285_s5 = scalar_lea.vmem %s4174_s3, %s2824_s29 }
  0xca   : > { %2997 = vmatpush3.bf16.msra.mxu1 %v3195_v11  ;;  %2976 = vmatprep.subr.bf16.mxu0 %v3196_v12  ;;  %v3212_v28 = vld [vmem:[%s3968_s7 + $0x70] sm:$0xff]   ;;  %v3216_v32 = vld [vmem:[%s3968_s7 + $0x78] sm:$0xff]   ;;  %v3224_v40 = vld [vmem:[%s3968_s7 + $0x140] sm:$0xff]   ;;  %v2830_v12 = vcombine.low %v4002_v33, %v4002_v33 }
  0xcb   : > { %2998 = vmatprep.subr.bf16.mxu1 %v3197_v13  ;;  %v3213_v29 = vld [vmem:[%s3968_s7 + $0xf0] sm:$0xff]   ;;  %v3217_v34 = vld [vmem:[%s3968_s7 + $0xf8] sm:$0xff]   ;;  %v3225_v41 = vld [vmem:[%s3968_s7 + $0x1c0] sm:$0xff]   ;;  %v2832_v13 = vcombine.low %v4008_v35, %v4008_v35 }
  0xcc   : > { %v3214_v30 = vld [vmem:[%s3968_s7 + $0x30] sm:$0xff]   ;;  %v3218_v36 = vld [vmem:[%s3968_s7 + $0x38] sm:$0xff]   ;;  %v3226_v43 = vld [vmem:[%s3968_s7 + $0x100] sm:$0xff]  }
  0xcd   : > { %2977 = vmatpush3.bf16.msra.mxu0 %v3198_v14  ;;  %v3215_v31 = vld [vmem:[%s3968_s7 + $0xb0] sm:$0xff]   ;;  %v3219_v37 = vld [vmem:[%s3968_s7 + $0xb8] sm:$0xff]   ;;  %v3227_v45 = vld [vmem:[%s3968_s7 + $0x180] sm:$0xff]  }
  0xce   : > { %2999 = vmatpush3.bf16.msra.mxu1 %v3199_v15  ;;  %2978 = vmatprep.subr.bf16.mxu0 %v3200_v16  ;;  %v3228_v46 = vld [vmem:[%s3968_s7 + $0x148] sm:$0xff]   ;;  %v3232_v50 = vld [vmem:[%s3968_s7 + $0x150] sm:$0xff]   ;;  %v3236_v54 = vld [vmem:[%s3968_s7 + $0x158] sm:$0xff]  }
  0xcf   : > { %3000 = vmatprep.subr.bf16.mxu1 %v3201_v17  ;;  %v3229_v47 = vld [vmem:[%s3968_s7 + $0x1c8] sm:$0xff]   ;;  %v3233_v51 = vld [vmem:[%s3968_s7 + $0x1d0] sm:$0xff]   ;;  %v3237_v55 = vld [vmem:[%s3968_s7 + $0x1d8] sm:$0xff]  }
  0xd0   : > { %v3230_v48 = vld [vmem:[%s3968_s7 + $0x108] sm:$0xff]   ;;  %v3234_v52 = vld [vmem:[%s3968_s7 + $0x110] sm:$0xff]   ;;  %v3238_v56 = vld [vmem:[%s3968_s7 + $0x118] sm:$0xff]  }
  0xd1   : > { %2979 = vmatpush3.bf16.msra.mxu0 %v3202_v18  ;;  %v3231_v49 = vld [vmem:[%s3968_s7 + $0x188] sm:$0xff]   ;;  %v3235_v53 = vld [vmem:[%s3968_s7 + $0x190] sm:$0xff]   ;;  %v3239_v57 = vld [vmem:[%s3968_s7 + $0x198] sm:$0xff]  }
  0xd2   : > { %3001 = vmatpush3.bf16.msra.mxu1 %v3203_v19  ;;  %2980 = vmatprep.subr.bf16.mxu0 %v3204_v20  ;;  %v3240_v58 = vld [vmem:[%s3968_s7 + $0x160] sm:$0xff]   ;;  %v3244_v62 = vld [vmem:[%s3968_s7 + $0x168] sm:$0xff]   ;;  %v3248_v2 = vld [vmem:[%s3968_s7 + $0x170] sm:$0xff]  }
  0xd3   : > { %3002 = vmatprep.subr.bf16.mxu1 %v3205_v21  ;;  %v3241_v59 = vld [vmem:[%s3968_s7 + $0x1e0] sm:$0xff]   ;;  %v3245_v63 = vld [vmem:[%s3968_s7 + $0x1e8] sm:$0xff]   ;;  %v3249_v3 = vld [vmem:[%s3968_s7 + $0x1f0] sm:$0xff]  }
  0xd4   : > { %v3242_v60 = vld [vmem:[%s3968_s7 + $0x120] sm:$0xff]   ;;  %v3246_v0 = vld [vmem:[%s3968_s7 + $0x128] sm:$0xff]   ;;  %v3250_v4 = vld [vmem:[%s3968_s7 + $0x130] sm:$0xff]  }
  0xd5   : > { %2981 = vmatpush3.bf16.msra.mxu0 %v3206_v22  ;;  %v3243_v61 = vld [vmem:[%s3968_s7 + $0x1a0] sm:$0xff]   ;;  %v3247_v1 = vld [vmem:[%s3968_s7 + $0x1a8] sm:$0xff]   ;;  %v3251_v5 = vld [vmem:[%s3968_s7 + $0x1b0] sm:$0xff]  }
  0xd6   : > { %3003 = vmatpush3.bf16.msra.mxu1 %v3207_v23  ;;  %2982 = vmatprep.subr.bf16.mxu0 %v3208_v24  ;;  %v3252_v6 = vld [vmem:[%s3968_s7 + $0x178] sm:$0xff]   ;;  %v4052_v7 = vld [vmem:[%s4171_s0 + $0x20] sm:$0xff]  ;;  %v4058_v9 = vld [vmem:[%s4171_s0 + $0x28] sm:$0xff] }
  0xd7   : > { %3004 = vmatprep.subr.bf16.mxu1 %v3209_v25  ;;  %v3253_v8 = vld [vmem:[%s3968_s7 + $0x1f8] sm:$0xff]   ;;  %v3260_v14 = vld [vmem:[%s3968_s7 + $0x240] sm:$0xff]   ;;  %v2835_v16 = vcombine.high %v4052_v7, %v4052_v7  ;;  %v2837_v18 = vcombine.high %v4058_v9, %v4058_v9  ;;  %v3264_v20 = vld [vmem:[%s3968_s7 + $0x248] sm:$0xff]  }
  0xd8   : > { %v3254_v10 = vld [vmem:[%s3968_s7 + $0x138] sm:$0xff]   ;;  %v3261_v15 = vld [vmem:[%s3968_s7 + $0x2c0] sm:$0xff]   ;;  %v3265_v21 = vld [vmem:[%s3968_s7 + $0x2c8] sm:$0xff]  }
  0xd9   : > { %2983 = vmatpush3.bf16.msra.mxu0 %v3210_v26  ;;  %v3255_v11 = vld [vmem:[%s3968_s7 + $0x1b8] sm:$0xff]   ;;  %v3262_v17 = vld [vmem:[%s3968_s7 + $0x200] sm:$0xff]   ;;  %v3266_v22 = vld [vmem:[%s3968_s7 + $0x208] sm:$0xff]  }
  0xda   : > { %3005 = vmatpush3.bf16.msra.mxu1 %v3211_v27  ;;  %2984 = vmatprep.subr.bf16.mxu0 %v3212_v28  ;;  %v3263_v19 = vld [vmem:[%s3968_s7 + $0x280] sm:$0xff]   ;;  %v3267_v23 = vld [vmem:[%s3968_s7 + $0x288] sm:$0xff]   ;;  %v3268_v24 = vld [vmem:[%s3968_s7 + $0x250] sm:$0xff]  }
  0xdb   : > { %3006 = vmatprep.subr.bf16.mxu1 %v3213_v29  ;;  %v3269_v25 = vld [vmem:[%s3968_s7 + $0x2d0] sm:$0xff]   ;;  %v3272_v28 = vld [vmem:[%s3968_s7 + $0x258] sm:$0xff]   ;;  %v3277_v33 = vld [vmem:[%s3968_s7 + $0x2e0] sm:$0xff]  }
  0xdc   : > { %v3270_v26 = vld [vmem:[%s3968_s7 + $0x210] sm:$0xff]   ;;  %v3273_v29 = vld [vmem:[%s3968_s7 + $0x2d8] sm:$0xff]   ;;  %v3279_v35 = vld [vmem:[%s3968_s7 + $0x2a0] sm:$0xff]  }
  0xdd   : > { %2985 = vmatpush3.bf16.msra.mxu0 %v3214_v30  ;;  %v3271_v27 = vld [vmem:[%s3968_s7 + $0x290] sm:$0xff]   ;;  %v3274_v30 = vld [vmem:[%s3968_s7 + $0x218] sm:$0xff]  }
  0xde   : > { %3007 = vmatpush3.bf16.msra.mxu1 %v3215_v31  ;;  %2986 = vmatprep.subr.bf16.mxu0 %v3216_v32  ;;  %v3275_v31 = vld [vmem:[%s3968_s7 + $0x298] sm:$0xff]   ;;  %v3276_v32 = vld [vmem:[%s3968_s7 + $0x260] sm:$0xff]  }
  0xdf   : > { %3008 = vmatprep.subr.bf16.mxu1 %v3217_v34  ;;  %v3278_v34 = vld [vmem:[%s3968_s7 + $0x220] sm:$0xff]  }
  0xe1   : > { %2987 = vmatpush3.bf16.msra.mxu0 %v3218_v36  ;;  %v3280_v36 = vld [vmem:[%s3968_s7 + $0x268] sm:$0xff]  }
  0xe2   : > { %3009 = vmatpush3.bf16.msra.mxu1 %v3219_v37  ;;  %3016 = vmatprep.subr.bf16.mxu0 %v3224_v40  ;;  %v3281_v37 = vld [vmem:[%s3968_s7 + $0x2e8] sm:$0xff]   ;;  %v3284_v40 = vld [vmem:[%s3968_s7 + $0x270] sm:$0xff]  }
  0xe3   : > { %3038 = vmatprep.subr.bf16.mxu1 %v3225_v41  ;;  %v3285_v41 = vld [vmem:[%s3968_s7 + $0x2f0] sm:$0xff]  }
  0xe4   : > { %2415 = vmatmul.mubr.bf16.vlgmr.msra.gmra.mrb[0].mxu0 %v2826_v38  ;;  %v3282_v38 = vld [vmem:[%s3968_s7 + $0x228] sm:$0xff]  }
  0xe5   : > { %2455 = vmatmul.mubr.bf16.vlgmr.msra.gmra.mrb[0].mxu1 %v2828_v39  ;;  %3017 = vmatpush3.bf16.msra.mxu0 %v3226_v43  ;;  %v3283_v39 = vld [vmem:[%s3968_s7 + $0x2a8] sm:$0xff]   ;;  %v3287_v43 = vld [vmem:[%s3968_s7 + $0x2b0] sm:$0xff]  }
  0xe6   : > { %3039 = vmatpush3.bf16.msra.mxu1 %v3227_v45  ;;  %2494 = vmatprep.mubr.bf16.mxu0 %v2831_v42  ;;  %v3286_v42 = vld [vmem:[%s3968_s7 + $0x230] sm:$0xff]   ;;  %v3289_v45 = vld [vmem:[%s3968_s7 + $0x2f8] sm:$0xff]  }
  0xe7   : > { %3018 = vmatprep.subr.bf16.mxu0 %v3228_v46  ;;  %2534 = vmatprep.mubr.bf16.mxu1 %v2833_v44  ;;  %v3288_v44 = vld [vmem:[%s3968_s7 + $0x278] sm:$0xff]  }
  0xe8   : > { %3040 = vmatprep.subr.bf16.mxu1 %v3229_v47  ;;  %v3290_v46 = vld [vmem:[%s3968_s7 + $0x238] sm:$0xff]  }
  0xe9   : > { %3019 = vmatpush3.bf16.msra.mxu0 %v3230_v48  ;;  %v3291_v47 = vld [vmem:[%s3968_s7 + $0x2b8] sm:$0xff]   ;;  %v2834_v48 = vcombine.low %v4052_v7, %v4052_v7  ;;  %v3317_v7 = vld [vmem:[%s3968_s7 + $0x3e8] sm:$0xff]  }
  0xea   : > { %3041 = vmatpush3.bf16.msra.mxu1 %v3231_v49  ;;  %3020 = vmatprep.subr.bf16.mxu0 %v3232_v50  ;;  %v2836_v49 = vcombine.low %v4058_v9, %v4058_v9  ;;  %v3296_v50 = vld [vmem:[%s3968_s7 + $0x340] sm:$0xff]   ;;  %v3319_v9 = vld [vmem:[%s3968_s7 + $0x3a8] sm:$0xff]  }
  0xeb   : > { %3042 = vmatprep.subr.bf16.mxu1 %v3233_v51  ;;  %v3297_v51 = vld [vmem:[%s3968_s7 + $0x3c0] sm:$0xff]  }
  0xed   : > { %3021 = vmatpush3.bf16.msra.mxu0 %v3234_v52  ;;  %v3298_v52 = vld [vmem:[%s3968_s7 + $0x300] sm:$0xff]  }
  0xee   : > { %3043 = vmatpush3.bf16.msra.mxu1 %v3235_v53  ;;  %3022 = vmatprep.subr.bf16.mxu0 %v3236_v54  ;;  %v3299_v53 = vld [vmem:[%s3968_s7 + $0x380] sm:$0xff]   ;;  %v3300_v54 = vld [vmem:[%s3968_s7 + $0x348] sm:$0xff]  }
  0xef   : > { %3044 = vmatprep.subr.bf16.mxu1 %v3237_v55  ;;  %v3301_v55 = vld [vmem:[%s3968_s7 + $0x3c8] sm:$0xff]  }
  0xf1   : > { %3023 = vmatpush3.bf16.msra.mxu0 %v3238_v56  ;;  %v3302_v56 = vld [vmem:[%s3968_s7 + $0x308] sm:$0xff]  }
  0xf2   : > { %3045 = vmatpush3.bf16.msra.mxu1 %v3239_v57  ;;  %3024 = vmatprep.subr.bf16.mxu0 %v3240_v58  ;;  %v3303_v57 = vld [vmem:[%s3968_s7 + $0x388] sm:$0xff]   ;;  %v3304_v58 = vld [vmem:[%s3968_s7 + $0x350] sm:$0xff]  }
  0xf3   : > { %3046 = vmatprep.subr.bf16.mxu1 %v3241_v59  ;;  %v3305_v59 = vld [vmem:[%s3968_s7 + $0x3d0] sm:$0xff]  }
  0xf5   : > { %3025 = vmatpush3.bf16.msra.mxu0 %v3242_v60  ;;  %v3306_v60 = vld [vmem:[%s3968_s7 + $0x310] sm:$0xff]  }
  0xf6   : > { %3047 = vmatpush3.bf16.msra.mxu1 %v3243_v61  ;;  %3026 = vmatprep.subr.bf16.mxu0 %v3244_v62  ;;  %v3307_v61 = vld [vmem:[%s3968_s7 + $0x390] sm:$0xff]   ;;  %v3308_v62 = vld [vmem:[%s3968_s7 + $0x358] sm:$0xff]  }
  0xf7   : > { %3048 = vmatprep.subr.bf16.mxu1 %v3245_v63  ;;  %v3309_v63 = vld [vmem:[%s3968_s7 + $0x3d8] sm:$0xff]  }
  0xf9   : > { %3027 = vmatpush3.bf16.msra.mxu0 %v3246_v0  ;;  %v3310_v0 = vld [vmem:[%s3968_s7 + $0x318] sm:$0xff]  }
  0xfa   : > { %3049 = vmatpush3.bf16.msra.mxu1 %v3247_v1  ;;  %3028 = vmatprep.subr.bf16.mxu0 %v3248_v2  ;;  %v3311_v1 = vld [vmem:[%s3968_s7 + $0x398] sm:$0xff]   ;;  %v3312_v2 = vld [vmem:[%s3968_s7 + $0x360] sm:$0xff]  }
  0xfb   : > { %3050 = vmatprep.subr.bf16.mxu1 %v3249_v3  ;;  %v3313_v3 = vld [vmem:[%s3968_s7 + $0x3e0] sm:$0xff]  }
  0xfd   : > { %3029 = vmatpush3.bf16.msra.mxu0 %v3250_v4  ;;  %v3314_v4 = vld [vmem:[%s3968_s7 + $0x320] sm:$0xff]  }
  0xfe   : > { %3051 = vmatpush3.bf16.msra.mxu1 %v3251_v5  ;;  %3030 = vmatprep.subr.bf16.mxu0 %v3252_v6  ;;  %v3315_v5 = vld [vmem:[%s3968_s7 + $0x3a0] sm:$0xff]   ;;  %v3316_v6 = vld [vmem:[%s3968_s7 + $0x368] sm:$0xff]  }
  0xff   : > { %3052 = vmatprep.subr.bf16.mxu1 %v3253_v8  ;;  %v3318_v8 = vld [vmem:[%s3968_s7 + $0x328] sm:$0xff]  }
 0x101   : > { %3031 = vmatpush3.bf16.msra.mxu0 %v3254_v10  ;;  %v3320_v10 = vld [vmem:[%s3968_s7 + $0x370] sm:$0xff]  }
 0x102   : > { %3053 = vmatpush3.bf16.msra.mxu1 %v3255_v11  ;;  %3060 = vmatprep.subr.bf16.mxu0 %v3260_v14  ;;  %v3321_v11 = vld [vmem:[%s3968_s7 + $0x3f0] sm:$0xff]   ;;  %v3324_v14 = vld [vmem:[%s3968_s7 + $0x378] sm:$0xff]  }
 0x103   : > { %3082 = vmatprep.subr.bf16.mxu1 %v3261_v15  ;;  %v3325_v15 = vld [vmem:[%s3968_s7 + $0x3f8] sm:$0xff]  }
 0x104   : > { %2495 = vmatmul.mubr.bf16.vlgmr.msra.gmra.mrb[4].mxu0 %v2830_v12  ;;  %v3322_v12 = vld [vmem:[%s3968_s7 + $0x330] sm:$0xff]  }
 0x105   : > { %2535 = vmatmul.mubr.bf16.vlgmr.msra.gmra.mrb[4].mxu1 %v2832_v13  ;;  %3061 = vmatpush3.bf16.msra.mxu0 %v3262_v17  ;;  %v3323_v13 = vld [vmem:[%s3968_s7 + $0x3b0] sm:$0xff]   ;;  %v3327_v17 = vld [vmem:[%s3968_s7 + $0x3b8] sm:$0xff]  }
 0x106   : > { %3083 = vmatpush3.bf16.msra.mxu1 %v3263_v19  ;;  %2574 = vmatprep.mubr.bf16.mxu0 %v2835_v16  ;;  %v3326_v16 = vld [vmem:[%s3968_s7 + $0x338] sm:$0xff]  }
 0x107   : > { %3062 = vmatprep.subr.bf16.mxu0 %v3264_v20  ;;  %2614 = vmatprep.mubr.bf16.mxu1 %v2837_v18  ;;  %v1293_v18 = vld [vmem:[%s4171_s0 + $0x30] sm:$0xff]  ;;  %v1294_v19 = vld [vmem:[%s4171_s0 + $0x38] sm:$0xff] }
 0x108   : > { %3084 = vmatprep.subr.bf16.mxu1 %v3265_v21  ;;  %v2838_v20 = vcombine.low %v1293_v18, %v1293_v18  ;;  %v2839_v21 = vcombine.high %v1293_v18, %v1293_v18 }
 0x109   : > { %3063 = vmatpush3.bf16.msra.mxu0 %v3266_v22  ;;  %v2840_v22 = vcombine.low %v1294_v19, %v1294_v19 }
 0x10a   : > { %3085 = vmatpush3.bf16.msra.mxu1 %v3267_v23  ;;  %3064 = vmatprep.subr.bf16.mxu0 %v3268_v24  ;;  %v2841_v23 = vcombine.high %v1294_v19, %v1294_v19 }
 0x10b   : > { %3086 = vmatprep.subr.bf16.mxu1 %v3269_v25 }
 0x10d   : > { %3065 = vmatpush3.bf16.msra.mxu0 %v3270_v26  ;;  %v2825_v26 = vld [vmem:[%s1277_s28] ss:$0 sm:$0xff] }
 0x10e   : > { %3087 = vmatpush3.bf16.msra.mxu1 %v3271_v27  ;;  %3066 = vmatprep.subr.bf16.mxu0 %v3272_v28 }
 0x10f   : > { %3088 = vmatprep.subr.bf16.mxu1 %v3273_v29 }
 0x111   : > { %3067 = vmatpush3.bf16.msra.mxu0 %v3274_v30 }
 0x112   : > { %3089 = vmatpush3.bf16.msra.mxu1 %v3275_v31  ;;  %3068 = vmatprep.subr.bf16.mxu0 %v3276_v32 }
 0x113   : > { %3090 = vmatprep.subr.bf16.mxu1 %v3277_v33 }
 0x115   : > { %3069 = vmatpush3.bf16.msra.mxu0 %v3278_v34 }
 0x116   : > { %3091 = vmatpush3.bf16.msra.mxu1 %v3279_v35  ;;  %3070 = vmatprep.subr.bf16.mxu0 %v3280_v36 }
 0x117   : > { %3092 = vmatprep.subr.bf16.mxu1 %v3281_v37 }
 0x119   : > { %3071 = vmatpush3.bf16.msra.mxu0 %v3282_v38 }
 0x11a   : > { %3093 = vmatpush3.bf16.msra.mxu1 %v3283_v39  ;;  %3072 = vmatprep.subr.bf16.mxu0 %v3284_v40 }
 0x11b   : > { %3094 = vmatprep.subr.bf16.mxu1 %v3285_v41 }
 0x11d   : > { %3073 = vmatpush3.bf16.msra.mxu0 %v3286_v42 }
 0x11e   : > { %3095 = vmatpush3.bf16.msra.mxu1 %v3287_v43  ;;  %3074 = vmatprep.subr.bf16.mxu0 %v3288_v44 }
 0x11f   : > { %3096 = vmatprep.subr.bf16.mxu1 %v3289_v45 }
 0x121   : > { %3075 = vmatpush3.bf16.msra.mxu0 %v3290_v46 }
 0x122   : > { %3097 = vmatpush3.bf16.msra.mxu1 %v3291_v47  ;;  %3104 = vmatprep.subr.bf16.mxu0 %v3296_v50 }
 0x123   : > { %3126 = vmatprep.subr.bf16.mxu1 %v3297_v51 }
 0x124   : > { %2575 = vmatmul.mubr.bf16.vlgmr.msra.gmra.mrb[8].mxu0 %v2834_v48 }
 0x125   : > { %2615 = vmatmul.mubr.bf16.vlgmr.msra.gmra.mrb[8].mxu1 %v2836_v49  ;;  %3105 = vmatpush3.bf16.msra.mxu0 %v3298_v52 }
 0x126   : > { %3127 = vmatpush3.bf16.msra.mxu1 %v3299_v53  ;;  %3106 = vmatprep.subr.bf16.mxu0 %v3300_v54 }
 0x127   : > { %3128 = vmatprep.subr.bf16.mxu1 %v3301_v55  ;;  %2654 = vmatprep.mubr.bf16.mxu0 %v2839_v21 }
 0x128   : > { %2694 = vmatprep.mubr.bf16.mxu1 %v2841_v23 }
 0x129   : > { %3107 = vmatpush3.bf16.msra.mxu0 %v3302_v56 }
 0x12a   : > { %3129 = vmatpush3.bf16.msra.mxu1 %v3303_v57  ;;  %3108 = vmatprep.subr.bf16.mxu0 %v3304_v58 }
 0x12b   : > { %3130 = vmatprep.subr.bf16.mxu1 %v3305_v59 }
 0x12d   : > { %3109 = vmatpush3.bf16.msra.mxu0 %v3306_v60 }
 0x12e   : > { %3131 = vmatpush3.bf16.msra.mxu1 %v3307_v61  ;;  %3110 = vmatprep.subr.bf16.mxu0 %v3308_v62 }
 0x12f   : > { %3132 = vmatprep.subr.bf16.mxu1 %v3309_v63 }
 0x131   : > { %3111 = vmatpush3.bf16.msra.mxu0 %v3310_v0 }
 0x132   : > { %3133 = vmatpush3.bf16.msra.mxu1 %v3311_v1  ;;  %3112 = vmatprep.subr.bf16.mxu0 %v3312_v2 }
 0x133   : > { %3134 = vmatprep.subr.bf16.mxu1 %v3313_v3 }
 0x135   : > { %3113 = vmatpush3.bf16.msra.mxu0 %v3314_v4 }
 0x136   : > { %3135 = vmatpush3.bf16.msra.mxu1 %v3315_v5  ;;  %3114 = vmatprep.subr.bf16.mxu0 %v3316_v6 }
 0x137   : > { %3136 = vmatprep.subr.bf16.mxu1 %v3317_v7 }
 0x139   : > { %3115 = vmatpush3.bf16.msra.mxu0 %v3318_v8 }
 0x13a   : > { %3137 = vmatpush3.bf16.msra.mxu1 %v3319_v9  ;;  %3116 = vmatprep.subr.bf16.mxu0 %v3320_v10 }
 0x13b   : > { %3138 = vmatprep.subr.bf16.mxu1 %v3321_v11 }
 0x13d   : > { %3117 = vmatpush3.bf16.msra.mxu0 %v3322_v12 }
 0x13e   : > { %3139 = vmatpush3.bf16.msra.mxu1 %v3323_v13  ;;  %3118 = vmatprep.subr.bf16.mxu0 %v3324_v14 }
 0x13f   : > { %3140 = vmatprep.subr.bf16.mxu1 %v3325_v15 }
 0x141   : > { %3119 = vmatpush3.bf16.msra.mxu0 %v3326_v16 }
 0x142   : > { %3141 = vmatpush3.bf16.msra.mxu1 %v3327_v17 }
 0x144   : > { %2655 = vmatmul.mubr.bf16.vlgmr.msra.gmra.mrb[12].mxu0 %v2838_v20 }
 0x145   : > { %2695 = vmatmul.mubr.bf16.vlgmr.msra.gmra.mrb[12].mxu1 %v2840_v22 }
 0x1b7   : > { %v2988_v24 = vpop.f32.mrb[0].mxu0 }
 0x1b8   : > { %v3010_v25 = vpop.f32.mrb[0].mxu1  ;;  %v2989_v27 = vpop.f32.mrb[1].mxu0 }
 0x1b9   : > { %v2990_v28 = vadd.f32 %v2989_v27, %v2988_v24  ;;  %v3011_v29 = vpop.f32.mrb[1].mxu1  ;;  %v2991_v30 = vpop.f32.mrb[2].mxu0 }
 0x1ba   : > { %v3012_v31 = vadd.f32 %v3011_v29, %v3010_v25  ;;  %v3013_v32 = vpop.f32.mrb[2].mxu1  ;;  %v2992_v33 = vpop.f32.mrb[3].mxu0 }
 0x1bb   : > { %v2417_v34 = vadd.f32 %v2990_v28, %v2825_v26  ;;  %v3014_v35 = vpop.f32.mrb[3].mxu1 }
 0x1bd   : > { %v2457_v36 = vadd.f32 %v3012_v31, %v2417_v34 }
 0x1d7   : > { %v3032_v37 = vpop.f32.mrb[4].mxu0 }
 0x1d8   : > { %v3054_v38 = vpop.f32.mrb[4].mxu1  ;;  %v3033_v39 = vpop.f32.mrb[5].mxu0 }
 0x1d9   : > { %v3034_v40 = vadd.f32 %v3033_v39, %v3032_v37  ;;  %v3055_v41 = vpop.f32.mrb[5].mxu1  ;;  %v3035_v42 = vpop.f32.mrb[6].mxu0 }
 0x1da   : > { %v3056_v43 = vadd.f32 %v3055_v41, %v3054_v38  ;;  %v3057_v44 = vpop.f32.mrb[6].mxu1  ;;  %v3036_v45 = vpop.f32.mrb[7].mxu0 }
 0x1db   : > { %v2497_v46 = vadd.f32 %v3034_v40, %v2457_v36  ;;  %v3058_v47 = vpop.f32.mrb[7].mxu1 }
 0x1dd   : > { %v2537_v48 = vadd.f32 %v3056_v43, %v2497_v46 }
 0x1f7   : > { %v3076_v49 = vpop.f32.mrb[8].mxu0 }
 0x1f8   : > { %v3098_v50 = vpop.f32.mrb[8].mxu1  ;;  %v3077_v51 = vpop.f32.mrb[9].mxu0 }
 0x1f9   : > { %v3078_v52 = vadd.f32 %v3077_v51, %v3076_v49  ;;  %v3099_v53 = vpop.f32.mrb[9].mxu1  ;;  %v3079_v54 = vpop.f32.mrb[10].mxu0 }
 0x1fa   : > { %v3100_v55 = vadd.f32 %v3099_v53, %v3098_v50  ;;  %v3101_v56 = vpop.f32.mrb[10].mxu1  ;;  %v3080_v57 = vpop.f32.mrb[11].mxu0 }
 0x1fb   : > { %v2577_v58 = vadd.f32 %v3078_v52, %v2537_v48  ;;  %v3102_v59 = vpop.f32.mrb[11].mxu1 }
 0x1fd   : > { %v2617_v60 = vadd.f32 %v3100_v55, %v2577_v58 }
 0x217   : > { %v3120_v61 = vpop.f32.mrb[12].mxu0 }
 0x218   : > { %v3142_v62 = vpop.f32.mrb[12].mxu1  ;;  %v3121_v63 = vpop.f32.mrb[13].mxu0 }
 0x219   : > { %v3143_v0 = vpop.f32.mrb[13].mxu1  ;;  %v3122_v1 = vadd.f32 %v3121_v63, %v3120_v61  ;;  %v3123_v3 = vpop.f32.mrb[14].mxu0 }
 0x21a   : > { %v3144_v2 = vadd.f32 %v3143_v0, %v3142_v62  ;;  %v3145_v4 = vpop.f32.mrb[14].mxu1  ;;  %v3124_v5 = vpop.f32.mrb[15].mxu0 }
 0x21b   : > { %v3146_v6 = vpop.f32.mrb[15].mxu1  ;;  %v2657_v7 = vadd.f32 %v3122_v1, %v2617_v60 }
 0x21d   : > { %v2697_v8 = vadd.f32 %v3144_v2, %v2657_v7 }
 0x21f   : > { %vm2702_vm0 = vcmp.gt.f32.partialorder %v2697_v8, 0.0  ;;  %v2703_v9 = vmul.f32 0.2, %v2697_v8 }
 0x221   : > { %v2704_v10 = vsel %vm2702_vm0, %v2697_v8, %v2703_v9 }
 0x222   : > { %v2705_v11 = vpack.c.bf16 %v2704_v10, %v2704_v10 }
 0x224   : > { %2706 = vst [vmem:[%s1285_s5] sm:$0xf] %v2705_v11 }
 0x225 PF: > { %s13_s16 = sadd.s32 1, %s3370_s16   ;;  %s4175_s12 = smov %s3358_s13 }
 0x226   : > { %p10_p10 = scmp.ge.s32.totalorder %s13_s16, 4   ;;  %s4176_s13 = smov %s3427_s20 }
 0x227   : > { %s4177_s14 = smov %s3366_s15  ;;  %s4178_s15 = smov %s4180_s17 }
 0x228   :  { %12 = sbr.rel (!%p10_p10) target bundleno = 3 (0x3), region = 114 }

</bundles_post_ra>
